<compile_context>
chip_gen: v5e
topology: v5e:2x2
jax: 0.10.0
libtpu: 0.0.40
codegen_flags: <defaults>
</compile_context>

<pallas_src>
import functools
import math

import jax
import jax.numpy as jnp
from jax import lax
from jax.experimental import pallas as pl
from jax.experimental.pallas import tpu as pltpu

_LN_EPS = 1e-5


@functools.lru_cache(maxsize=None)
def _vmem_limit_bytes():
    # ~75% of physical VMEM: 96 MiB on v5e/v6e (128 MiB), 48 MiB on v7x (64).
    try:
        cap = int(pltpu.get_tpu_info().vmem_capacity_bytes)
    except Exception:
        cap = 64 * 1024 * 1024          # v7x-safe fallback
    return min((cap * 3) // 4, 100 * 1024 * 1024)


def _cp(*sems):
    return pltpu.CompilerParams(dimension_semantics=sems,
                                vmem_limit_bytes=_vmem_limit_bytes())


def _cost(flops, transcendentals, bytes_accessed):
    return pl.CostEstimate(flops=int(flops), transcendentals=int(transcendentals),
                           bytes_accessed=int(bytes_accessed))


def _pick_tile(n, target, mult=8):
    """Largest multiple-of-`mult` divisor of n that is <= target, else n."""
    # TODO(synk): ragged extents (e.g. a 77-token CLIP context) fall back to a
    # single full-extent block; a cdiv grid + masked tail would pipeline those.
    if n <= target:
        return n
    t = target - target % mult
    while t >= mult:
        if n % t == 0:
            return t
        t -= mult
    return n


def _layernorm_f32(x, g, b):
    x = x.astype(jnp.float32)
    mean = jnp.mean(x, axis=-1, keepdims=True)
    var = jnp.mean(jnp.square(x - mean), axis=-1, keepdims=True)
    return (x - mean) * lax.rsqrt(var + _LN_EPS) * g + b


# --------------------------------------------------------------------------
# Kernels
# --------------------------------------------------------------------------
def _ln_qkv_head_kernel(x_ref, g_ref, b_ref, wq_ref, wk_ref, wv_ref,
                        q_ref, k_ref, v_ref, h_sc):
    # grid = (B, row_tiles, heads); heads innermost ("arbitrary").
    @pl.when(pl.program_id(2) == 0)
    def _():
        h_sc[...] = _layernorm_f32(x_ref[0], g_ref[...],
                                   b_ref[...]).astype(jnp.bfloat16)

    h = h_sc[...]                                          # (TR, D) bf16
    q_ref[0, 0] = jnp.dot(h, wq_ref[0],
                          preferred_element_type=jnp.float32).astype(q_ref.dtype)
    k_ref[0, 0] = jnp.dot(h, wk_ref[0],
                          preferred_element_type=jnp.float32).astype(k_ref.dtype)
    v_ref[0, 0] = jnp.dot(h, wv_ref[0],
                          preferred_element_type=jnp.float32).astype(v_ref.dtype)


def _ln_q_head_kernel(x_ref, g_ref, b_ref, wq_ref, q_ref, h_sc):
    @pl.when(pl.program_id(2) == 0)
    def _():
        h_sc[...] = _layernorm_f32(x_ref[0], g_ref[...],
                                   b_ref[...]).astype(jnp.bfloat16)

    q_ref[0, 0] = jnp.dot(h_sc[...], wq_ref[0],
                          preferred_element_type=jnp.float32).astype(q_ref.dtype)


def _kv_head_kernel(c_ref, wk_ref, wv_ref, k_ref, v_ref):
    c = c_ref[0]                                           # (TM, Dc) bf16
    k_ref[0, 0] = jnp.dot(c, wk_ref[0],
                          preferred_element_type=jnp.float32).astype(k_ref.dtype)
    v_ref[0, 0] = jnp.dot(c, wv_ref[0],
                          preferred_element_type=jnp.float32).astype(v_ref.dtype)


def _flash_attn_kernel(q_ref, k_ref, v_ref, o_ref, m_sc, l_sc, acc_sc, *, scale):
    ki = pl.program_id(3)

    @pl.when(ki == 0)
    def _():
        m_sc[...] = jnp.full(m_sc.shape, -jnp.inf, m_sc.dtype)
        l_sc[...] = jnp.zeros(l_sc.shape, l_sc.dtype)
        acc_sc[...] = jnp.zeros(acc_sc.shape, acc_sc.dtype)

    q = q_ref[0, 0]                       # (TQ, Dh) bf16
    k = k_ref[0, 0]                       # (TK, Dh) bf16
    v = v_ref[0, 0]                       # (TK, Dh) bf16

    # q @ k^T without an explicit transpose (contract last dims).
    s = lax.dot_general(q, k, (((1,), (1,)), ((), ())),
                        preferred_element_type=jnp.float32) * scale

    m_prev = m_sc[...]
    m_new = jnp.maximum(m_prev, jnp.max(s, axis=-1, keepdims=True))
    alpha = jnp.exp(m_prev - m_new)
    p = jnp.exp(s - m_new)
    l_sc[...] = alpha * l_sc[...] + jnp.sum(p, axis=-1, keepdims=True)
    acc_sc[...] = alpha * acc_sc[...] + jnp.dot(
        p.astype(v.dtype), v, preferred_element_type=jnp.float32)
    m_sc[...] = m_new

    @pl.when(ki == pl.num_programs(3) - 1)
    def _():
        inv = pl.reciprocal(l_sc[...], approx=True)   # EUP; frees the VALU
        o_ref[0, 0] = (acc_sc[...] * inv).astype(o_ref.dtype)


def _out_proj_kernel(o_ref, wo_ref, bo_ref, res_ref, y_ref, *, heads):
    # Head merge via lane concatenation -> ONE MXU matmul with K = H*Dh.
    o = o_ref[0]                                           # (H, TR, Dh) bf16
    o_cat = jnp.concatenate([o[hh] for hh in range(heads)], axis=-1)
    y = jnp.dot(o_cat, wo_ref[...], preferred_element_type=jnp.float32)
    y = y + bo_ref[...] + res_ref[0].astype(jnp.float32)
    y_ref[0] = y.astype(y_ref.dtype)


def _ln_geglu_ff_kernel(x_ref, g_ref, b_ref, w1v_ref, b1v_ref, w1g_ref,
                        b1g_ref, w2_ref, b2_ref, y_ref, h_sc, acc_sc):
    # grid = (row_tiles, f_tiles); F streamed on the innermost axis.
    fi = pl.program_id(1)

    @pl.when(fi == 0)
    def _():
        h_sc[...] = _layernorm_f32(x_ref[...], g_ref[...],
                                   b_ref[...]).astype(jnp.bfloat16)
        acc_sc[...] = jnp.zeros(acc_sc.shape, acc_sc.dtype)

    h = h_sc[...]                                          # (TR, D) bf16
    val = jnp.dot(h, w1v_ref[...], preferred_element_type=jnp.float32) + b1v_ref[...]
    gate = jnp.dot(h, w1g_ref[...], preferred_element_type=jnp.float32) + b1g_ref[...]
    # exact erf GELU (matches torch.nn.functional.gelu default)
    gelu = 0.5 * gate * (1.0 + lax.erf(gate * (1.0 / math.sqrt(2.0))))
    a = (val * gelu).astype(jnp.bfloat16)
    acc_sc[...] += jnp.dot(a, w2_ref[...], preferred_element_type=jnp.float32)

    @pl.when(fi == pl.num_programs(1) - 1)
    def _():
        y = acc_sc[...] + b2_ref[...] + x_ref[...].astype(jnp.float32)
        y_ref[...] = y.astype(y_ref.dtype)


# --------------------------------------------------------------------------
# Pallas-call wrappers
# --------------------------------------------------------------------------
def ln_qkv_project(x, gamma, beta, wq, wk, wv):
    B, N, D = x.shape
    heads, _, dim_head = wq.shape
    HD = heads * dim_head
    TR = _pick_tile(N, 512)
    grid = (B, N // TR, heads)
    out = jax.ShapeDtypeStruct((B, heads, N, dim_head), jnp.bfloat16)
    w_spec = pl.BlockSpec((1, D, dim_head), lambda b, r, h: (h, 0, 0))
    vec = pl.BlockSpec((1, D), lambda b, r, h: (0, 0))
    head_out = pl.BlockSpec((1, 1, TR, dim_head), lambda b, r, h: (b, h, r, 0))
    return pl.pallas_call(
        _ln_qkv_head_kernel,
        out_shape=(out, out, out),
        grid=grid,
        in_specs=[pl.BlockSpec((1, TR, D), lambda b, r, h: (b, r, 0)),
                  vec, vec, w_spec, w_spec, w_spec],
        out_specs=(head_out, head_out, head_out),
        scratch_shapes=[pltpu.VMEM((TR, D), jnp.bfloat16)],
        compiler_params=_cp("parallel", "parallel", "arbitrary"),
        cost_estimate=_cost(6 * B * N * D * HD, 0,
                            2 * B * N * D + 6 * D * HD + 6 * B * N * HD),
    )(x, gamma, beta, wq, wk, wv)


def ln_q_project(x, gamma, beta, wq):
    B, N, D = x.shape
    heads, _, dim_head = wq.shape
    HD = heads * dim_head
    TR = _pick_tile(N, 512)
    grid = (B, N // TR, heads)
    return pl.pallas_call(
        _ln_q_head_kernel,
        out_shape=jax.ShapeDtypeStruct((B, heads, N, dim_head), jnp.bfloat16),
        grid=grid,
        in_specs=[pl.BlockSpec((1, TR, D), lambda b, r, h: (b, r, 0)),
                  pl.BlockSpec((1, D), lambda b, r, h: (0, 0)),
                  pl.BlockSpec((1, D), lambda b, r, h: (0, 0)),
                  pl.BlockSpec((1, D, dim_head), lambda b, r, h: (h, 0, 0))],
        out_specs=pl.BlockSpec((1, 1, TR, dim_head), lambda b, r, h: (b, h, r, 0)),
        scratch_shapes=[pltpu.VMEM((TR, D), jnp.bfloat16)],
        compiler_params=_cp("parallel", "parallel", "arbitrary"),
        cost_estimate=_cost(2 * B * N * D * HD, 0,
                            2 * B * N * D + 2 * D * HD + 2 * B * N * HD),
    )(x, gamma, beta, wq)


def kv_project(context, wk, wv):
    B, M, Dc = context.shape
    heads, _, dim_head = wk.shape
    HD = heads * dim_head
    TM = _pick_tile(M, 512)
    grid = (B, M // TM, heads)
    out = jax.ShapeDtypeStruct((B, heads, M, dim_head), jnp.bfloat16)
    w_spec = pl.BlockSpec((1, Dc, dim_head), lambda b, r, h: (h, 0, 0))
    head_out = pl.BlockSpec((1, 1, TM, dim_head), lambda b, r, h: (b, h, r, 0))
    return pl.pallas_call(
        _kv_head_kernel,
        out_shape=(out, out),
        grid=grid,
        in_specs=[pl.BlockSpec((1, TM, Dc), lambda b, r, h: (b, r, 0)),
                  w_spec, w_spec],
        out_specs=(head_out, head_out),
        compiler_params=_cp("parallel", "parallel", "parallel"),
        cost_estimate=_cost(4 * B * M * Dc * HD, 0,
                            2 * B * M * Dc + 4 * Dc * HD + 4 * B * M * HD),
    )(context, wk, wv)


def flash_attention(q, k, v, scale):
    B, H, N, Dh = q.shape
    M = k.shape[2]
    TQ = _pick_tile(N, 512)
    TK = _pick_tile(M, 1024)          # bigger KV tile -> fewer rescale steps
    grid = (B, H, N // TQ, M // TK)
    return pl.pallas_call(
        functools.partial(_flash_attn_kernel, scale=scale),
        out_shape=jax.ShapeDtypeStruct((B, H, N, Dh), jnp.bfloat16),
        grid=grid,
        in_specs=[
            pl.BlockSpec((1, 1, TQ, Dh), lambda b, h, qi, ki: (b, h, qi, 0)),
            pl.BlockSpec((1, 1, TK, Dh), lambda b, h, qi, ki: (b, h, ki, 0)),
            pl.BlockSpec((1, 1, TK, Dh), lambda b, h, qi, ki: (b, h, ki, 0)),
        ],
        out_specs=pl.BlockSpec((1, 1, TQ, Dh), lambda b, h, qi, ki: (b, h, qi, 0)),
        scratch_shapes=[pltpu.VMEM((TQ, 1), jnp.float32),
                        pltpu.VMEM((TQ, 1), jnp.float32),
                        pltpu.VMEM((TQ, Dh), jnp.float32)],
        compiler_params=_cp("parallel", "parallel", "parallel", "arbitrary"),
        cost_estimate=_cost(4 * B * H * N * M * Dh, B * H * N * M,
                            2 * B * H * Dh * (N + 2 * M)),
    )(q, k, v)


def attn_out_project(o_heads, wo, bo, residual):
    B, H, N, Dh = o_heads.shape
    HD, D = wo.shape
    TR = _pick_tile(N, 512)
    grid = (B, N // TR)
    return pl.pallas_call(
        functools.partial(_out_proj_kernel, heads=H),
        out_shape=jax.ShapeDtypeStruct((B, N, D), jnp.bfloat16),
        grid=grid,
        in_specs=[
            pl.BlockSpec((1, H, TR, Dh), lambda b, r: (b, 0, r, 0)),
            pl.BlockSpec((HD, D), lambda b, r: (0, 0)),
            pl.BlockSpec((1, D), lambda b, r: (0, 0)),
            pl.BlockSpec((1, TR, D), lambda b, r: (b, r, 0)),
        ],
        out_specs=pl.BlockSpec((1, TR, D), lambda b, r: (b, r, 0)),
        compiler_params=_cp("parallel", "parallel"),
        cost_estimate=_cost(2 * B * N * HD * D, 0,
                            2 * B * N * HD + 2 * HD * D + 4 * B * N * D),
    )(o_heads, wo, bo, residual)


def ff_geglu_block(x, p, gamma, beta):
    B, N, D = x.shape
    F = p["w2"].shape[0]
    R = B * N
    x2 = x.reshape(R, D)
    TR = _pick_tile(R, 512)
    TF = _pick_tile(F, 1024, mult=128)   # stream F; keeps SD weights off VMEM
    grid = (R // TR, F // TF)
    vec_d = pl.BlockSpec((1, D), lambda i, fi: (0, 0))
    vec_f = pl.BlockSpec((1, TF), lambda i, fi: (0, fi))
    w1_spec = pl.BlockSpec((D, TF), lambda i, fi: (0, fi))
    out = pl.pallas_call(
        _ln_geglu_ff_kernel,
        out_shape=jax.ShapeDtypeStruct((R, D), jnp.bfloat16),
        grid=grid,
        in_specs=[pl.BlockSpec((TR, D), lambda i, fi: (i, 0)),
                  vec_d, vec_d,
                  w1_spec, vec_f, w1_spec, vec_f,
                  pl.BlockSpec((TF, D), lambda i, fi: (fi, 0)),
                  vec_d],
        out_specs=pl.BlockSpec((TR, D), lambda i, fi: (i, 0)),
        scratch_shapes=[pltpu.VMEM((TR, D), jnp.bfloat16),
                        pltpu.VMEM((TR, D), jnp.float32)],
        compiler_params=_cp("parallel", "arbitrary"),
        cost_estimate=_cost(6 * R * D * F, R * F, 4 * R * D + 6 * D * F),
    )(x2, gamma, beta, p["w1v"], p["b1v"], p["w1g"], p["b1g"], p["w2"], p["b2"])
    return out.reshape(B, N, D)


# --------------------------------------------------------------------------
# Module-level forward
# --------------------------------------------------------------------------
def self_attention_block(x, p, gamma, beta, dim_head):
    q, k, v = ln_qkv_project(x, gamma, beta, p["wq"], p["wk"], p["wv"])
    o = flash_attention(q, k, v, dim_head ** -0.5)
    return attn_out_project(o, p["wo"], p["bo"], x)      # residual fused


def cross_attention_block(x, context, p, gamma, beta, dim_head):
    q = ln_q_project(x, gamma, beta, p["wq"])
    k, v = kv_project(context, p["wk"], p["wv"])
    o = flash_attention(q, k, v, dim_head ** -0.5)
    return attn_out_project(o, p["wo"], p["bo"], x)      # residual fused


def basic_transformer_block(x, context, params):
    # TODO(synk): optional attention mask and use_aq=True (activation
    # quantizers) branches of cross_attn_forward are not implemented; this is
    # the use_aq=False inference path.
    in_dtype = x.dtype
    dim_head = params["attn1"]["wq"].shape[-1]
    x = x.astype(jnp.bfloat16)            # bf16 residual stream between kernels
    context = context.astype(jnp.bfloat16)
    x = self_attention_block(x, params["attn1"], params["n1_g"],
                             params["n1_b"], dim_head)
    x = cross_attention_block(x, context, params["attn2"], params["n2_g"],
                              params["n2_b"], dim_head)
    x = ff_geglu_block(x, params["ff"], params["n3_g"], params["n3_b"])
    return x.astype(in_dtype)


# --------------------------------------------------------------------------
# Deterministic parameter construction (synthetic, no checkpoint).
# Weights are cast to bf16 and pre-shaped ONCE here (not per forward).
# --------------------------------------------------------------------------
def make_params(key, dim, ctx_dim, heads, dim_head, ff_mult=4):
    inner = heads * dim_head
    inner_ff = dim * ff_mult
    keys = jax.random.split(key, 16)

    def w(k, shape, s=0.05):
        return jax.random.normal(k, shape, dtype=jnp.float32) * s

    def split_heads(wmat):   # (D_in, inner) f32 -> (heads, D_in, dim_head) bf16
        d_in = wmat.shape[0]
        return (wmat.reshape(d_in, heads, dim_head)
                    .transpose(1, 0, 2).astype(jnp.bfloat16))

    attn1 = dict(
        wq=split_heads(w(keys[0], (dim, inner))),
        wk=split_heads(w(keys[1], (dim, inner))),
        wv=split_heads(w(keys[2], (dim, inner))),
        wo=w(keys[3], (inner, dim)).astype(jnp.bfloat16),
        bo=w(keys[4], (dim,)).reshape(1, dim),
    )
    attn2 = dict(
        wq=split_heads(w(keys[5], (dim, inner))),
        wk=split_heads(w(keys[6], (ctx_dim, inner))),
        wv=split_heads(w(keys[7], (ctx_dim, inner))),
        wo=w(keys[8], (inner, dim)).astype(jnp.bfloat16),
        bo=w(keys[9], (dim,)).reshape(1, dim),
    )
    w1 = w(keys[10], (dim, 2 * inner_ff))
    b1 = w(keys[11], (2 * inner_ff,))
    # GEGLU (diffusers convention): first half = value, second half = gate.
    ff = dict(
        w1v=w1[:, :inner_ff].astype(jnp.bfloat16),
        w1g=w1[:, inner_ff:].astype(jnp.bfloat16),
        b1v=b1[:inner_ff].reshape(1, inner_ff),
        b1g=b1[inner_ff:].reshape(1, inner_ff),
        w2=w(keys[12], (inner_ff, dim)).astype(jnp.bfloat16),
        b2=w(keys[13], (dim,)).reshape(1, dim),
    )
    ones = jnp.ones((1, dim), jnp.float32)
    zeros = jnp.zeros((1, dim), jnp.float32)
    return dict(attn1=attn1, attn2=attn2, ff=ff,
                n1_g=ones, n1_b=zeros,
                n2_g=ones, n2_b=zeros,
                n3_g=ones, n3_b=zeros)


if __name__ == "__main__":
    B, N, D = 2, 8, 32          # batch, tokens, model dim
    M, Dc = 8, 24               # context tokens, context dim
    heads, dim_head = 4, 8      # inner attention dim = 32

    key = jax.random.PRNGKey(0)
    kx, kc, kp = jax.random.split(key, 3)
    x = jax.random.normal(kx, (B, N, D), dtype=jnp.float32)
    context = jax.random.normal(kc, (B, M, Dc), dtype=jnp.float32)
    params = make_params(kp, D, Dc, heads, dim_head)

    fwd = jax.jit(basic_transformer_block)
    out = jax.block_until_ready(fwd(x, context, params))

    assert out.shape == (B, N, D)
    assert bool(jnp.all(jnp.isfinite(out)))
    print("KERNEL_OK")
</pallas_src>

<mosaic_0001>
module attributes {stable_mosaic.version = 11 : i64} {
  func.func @_flash_attn_kernel(%arg0: i32, %arg1: i32, %arg2: i32, %arg3: i32, %arg4: memref<1x1x8x8xbf16, #tpu.memory_space<vmem>>, %arg5: memref<1x1x8x8xbf16, #tpu.memory_space<vmem>>, %arg6: memref<1x1x8x8xbf16, #tpu.memory_space<vmem>>, %arg7: memref<1x1x8x8xbf16, #tpu.memory_space<vmem>>, %arg8: memref<8x1xf32, #tpu.memory_space<vmem>>, %arg9: memref<8x1xf32, #tpu.memory_space<vmem>>, %arg10: memref<8x8xf32, #tpu.memory_space<vmem>>) attributes {dimension_semantics = [#tpu.dimension_semantics<parallel>, #tpu.dimension_semantics<parallel>, #tpu.dimension_semantics<parallel>, #tpu.dimension_semantics<arbitrary>], iteration_bounds = array<i64: 2, 4, 1, 1>, scalar_prefetch = 0 : i64, scratch_operands = 3 : i64, tpu.core_type = #tpu.core_type<tc>, window_params = [{transform_indices = @transform_0, window_bounds = array<i64: 1, 1, 8, 8>}, {transform_indices = @transform_1, window_bounds = array<i64: 1, 1, 8, 8>}, {transform_indices = @transform_2, window_bounds = array<i64: 1, 1, 8, 8>}, {transform_indices = @transform_3, window_bounds = array<i64: 1, 1, 8, 8>}]} {
    %c0_i32 = arith.constant 0 : i32
    %0 = arith.cmpi eq, %arg3, %c0_i32 : i32
    %1 = arith.extui %0 : i1 to i32
    %c0_i32_0 = arith.constant 0 : i32
    %2 = arith.cmpi ne, %1, %c0_i32_0 : i32
    scf.if %2 {
      %cst_30 = arith.constant 0xFF800000 : f32
      %38 = vector.broadcast %cst_30 : f32 to vector<8x1xf32>
      %c0_31 = arith.constant 0 : index
      %c0_32 = arith.constant 0 : index
      %39 = vector.load %arg8[%c0_31, %c0_32] : memref<8x1xf32, #tpu.memory_space<vmem>>, vector<8x1xf32>
      tpu.vector_store %arg8[%c0_31, %c0_32], %38 {strides = array<i32>} : memref<8x1xf32, #tpu.memory_space<vmem>>, vector<8x1xf32>,
      %cst_33 = arith.constant 0.000000e+00 : f32
      %40 = vector.broadcast %cst_33 : f32 to vector<8x1xf32>
      %c0_34 = arith.constant 0 : index
      %c0_35 = arith.constant 0 : index
      %41 = vector.load %arg9[%c0_34, %c0_35] : memref<8x1xf32, #tpu.memory_space<vmem>>, vector<8x1xf32>
      tpu.vector_store %arg9[%c0_34, %c0_35], %40 {strides = array<i32>} : memref<8x1xf32, #tpu.memory_space<vmem>>, vector<8x1xf32>,
      %cst_36 = arith.constant 0.000000e+00 : f32
      %42 = vector.broadcast %cst_36 : f32 to vector<8x8xf32>
      %c0_37 = arith.constant 0 : index
      %c0_38 = arith.constant 0 : index
      %43 = vector.load %arg10[%c0_37, %c0_38] : memref<8x8xf32, #tpu.memory_space<vmem>>, vector<8x8xf32>
      tpu.vector_store %arg10[%c0_37, %c0_38], %42 {strides = array<i32>} : memref<8x8xf32, #tpu.memory_space<vmem>>, vector<8x8xf32>,
    } else {
    }
    %c0 = arith.constant 0 : index
    %c0_1 = arith.constant 0 : index
    %c0_2 = arith.constant 0 : index
    %c0_3 = arith.constant 0 : index
    %3 = vector.load %arg4[%c0, %c0_1, %c0_2, %c0_3] : memref<1x1x8x8xbf16, #tpu.memory_space<vmem>>, vector<1x1x8x8xbf16>
    %4 = vector.shape_cast %3 : vector<1x1x8x8xbf16> to vector<8x8xbf16>
    %c0_4 = arith.constant 0 : index
    %c0_5 = arith.constant 0 : index
    %c0_6 = arith.constant 0 : index
    %c0_7 = arith.constant 0 : index
    %5 = vector.load %arg5[%c0_4, %c0_5, %c0_6, %c0_7] : memref<1x1x8x8xbf16, #tpu.memory_space<vmem>>, vector<1x1x8x8xbf16>
    %6 = vector.shape_cast %5 : vector<1x1x8x8xbf16> to vector<8x8xbf16>
    %c0_8 = arith.constant 0 : index
    %c0_9 = arith.constant 0 : index
    %c0_10 = arith.constant 0 : index
    %c0_11 = arith.constant 0 : index
    %7 = vector.load %arg6[%c0_8, %c0_9, %c0_10, %c0_11] : memref<1x1x8x8xbf16, #tpu.memory_space<vmem>>, vector<1x1x8x8xbf16>
    %8 = vector.shape_cast %7 : vector<1x1x8x8xbf16> to vector<8x8xbf16>
    %cst = arith.constant dense<0.000000e+00> : vector<8x8xf32>
    %9 = tpu.matmul %4, %6, %cst {dimension_numbers = #tpu.dot_dimension_numbers<[1], [1], [0], [0], [0, 0, 1, 0], [], []>} : vector<8x8xbf16>, vector<8x8xbf16>, vector<8x8xf32> -> vector<8x8xf32>
    %cst_12 = arith.constant 0.353553385 : f32
    %10 = vector.broadcast %cst_12 : f32 to vector<8x8xf32>
    %11 = arith.mulf %9, %10 : vector<8x8xf32>
    %c0_13 = arith.constant 0 : index
    %c0_14 = arith.constant 0 : index
    %12 = vector.load %arg8[%c0_13, %c0_14] : memref<8x1xf32, #tpu.memory_space<vmem>>, vector<8x1xf32>
    %cst_15 = arith.constant dense<0xFF800000> : vector<8xf32>
    %13 = vector.multi_reduction <maximumf>, %11, %cst_15 [1] : vector<8x8xf32> to vector<8xf32>
    %14 = vector.shape_cast %13 : vector<8xf32> to vector<8x1xf32>
    %15 = arith.maximumf %12, %14 : vector<8x1xf32>
    %16 = arith.subf %12, %15 : vector<8x1xf32>
    %17 = math.exp %16 : vector<8x1xf32>
    %18 = vector.broadcast %15 : vector<8x1xf32> to vector<8x8xf32>
    %19 = arith.subf %11, %18 : vector<8x8xf32>
    %20 = math.exp %19 : vector<8x8xf32>
    %c0_16 = arith.constant 0 : index
    %c0_17 = arith.constant 0 : index
    %21 = vector.load %arg9[%c0_16, %c0_17] : memref<8x1xf32, #tpu.memory_space<vmem>>, vector<8x1xf32>
    %22 = arith.mulf %17, %21 : vector<8x1xf32>
    %cst_18 = arith.constant dense<0.000000e+00> : vector<8xf32>
    %23 = vector.multi_reduction <add>, %20, %cst_18 [1] : vector<8x8xf32> to vector<8xf32>
    %24 = vector.shape_cast %23 : vector<8xf32> to vector<8x1xf32>
    %25 = arith.addf %22, %24 : vector<8x1xf32>
    %c0_19 = arith.constant 0 : index
    %c0_20 = arith.constant 0 : index
    %26 = vector.load %arg9[%c0_19, %c0_20] : memref<8x1xf32, #tpu.memory_space<vmem>>, vector<8x1xf32>
    tpu.vector_store %arg9[%c0_19, %c0_20], %25 {strides = array<i32>} : memref<8x1xf32, #tpu.memory_space<vmem>>, vector<8x1xf32>,
    %c0_21 = arith.constant 0 : index
    %c0_22 = arith.constant 0 : index
    %27 = vector.load %arg10[%c0_21, %c0_22] : memref<8x8xf32, #tpu.memory_space<vmem>>, vector<8x8xf32>
    %28 = vector.broadcast %17 : vector<8x1xf32> to vector<8x8xf32>
    %29 = arith.mulf %28, %27 : vector<8x8xf32>
    %30 = arith.truncf %20 : vector<8x8xf32> to vector<8x8xbf16>
    %cst_23 = arith.constant dense<0.000000e+00> : vector<8x8xf32>
    %31 = tpu.matmul %30, %8, %cst_23 {dimension_numbers = #tpu.dot_dimension_numbers<[1], [0], [0], [1], [0, 0, 1, 1], [], []>} : vector<8x8xbf16>, vector<8x8xbf16>, vector<8x8xf32> -> vector<8x8xf32>
    %32 = arith.addf %29, %31 : vector<8x8xf32>
    %c0_24 = arith.constant 0 : index
    %c0_25 = arith.constant 0 : index
    %33 = vector.load %arg10[%c0_24, %c0_25] : memref<8x8xf32, #tpu.memory_space<vmem>>, vector<8x8xf32>
    tpu.vector_store %arg10[%c0_24, %c0_25], %32 {strides = array<i32>} : memref<8x8xf32, #tpu.memory_space<vmem>>, vector<8x8xf32>,
    %c0_26 = arith.constant 0 : index
    %c0_27 = arith.constant 0 : index
    %34 = vector.load %arg8[%c0_26, %c0_27] : memref<8x1xf32, #tpu.memory_space<vmem>>, vector<8x1xf32>
    tpu.vector_store %arg8[%c0_26, %c0_27], %15 {strides = array<i32>} : memref<8x1xf32, #tpu.memory_space<vmem>>, vector<8x1xf32>,
    %c0_i32_28 = arith.constant 0 : i32
    %35 = arith.cmpi eq, %arg3, %c0_i32_28 : i32
    %36 = arith.extui %35 : i1 to i32
    %c0_i32_29 = arith.constant 0 : i32
    %37 = arith.cmpi ne, %36, %c0_i32_29 : i32
    scf.if %37 {
      %c0_30 = arith.constant 0 : index
      %c0_31 = arith.constant 0 : index
      %38 = vector.load %arg9[%c0_30, %c0_31] : memref<8x1xf32, #tpu.memory_space<vmem>>, vector<8x1xf32>
      %39 = tpu.reciprocal %38 {approx = true} : vector<8x1xf32> -> vector<8x1xf32>
      %c0_32 = arith.constant 0 : index
      %c0_33 = arith.constant 0 : index
      %40 = vector.load %arg10[%c0_32, %c0_33] : memref<8x8xf32, #tpu.memory_space<vmem>>, vector<8x8xf32>
      %41 = vector.broadcast %39 : vector<8x1xf32> to vector<8x8xf32>
      %42 = arith.mulf %40, %41 : vector<8x8xf32>
      %43 = arith.truncf %42 : vector<8x8xf32> to vector<8x8xbf16>
      %c0_34 = arith.constant 0 : index
      %c0_35 = arith.constant 0 : index
      %c0_36 = arith.constant 0 : index
      %c0_37 = arith.constant 0 : index
      %44 = vector.load %arg7[%c0_34, %c0_35, %c0_36, %c0_37] : memref<1x1x8x8xbf16, #tpu.memory_space<vmem>>, vector<1x1x8x8xbf16>
      %45 = vector.shape_cast %44 : vector<1x1x8x8xbf16> to vector<8x8xbf16>
      %46 = vector.shape_cast %43 : vector<8x8xbf16> to vector<1x1x8x8xbf16>
      tpu.vector_store %arg7[%c0_34, %c0_35, %c0_36, %c0_37], %46 {strides = array<i32>} : memref<1x1x8x8xbf16, #tpu.memory_space<vmem>>, vector<1x1x8x8xbf16>,
    } else {
    }
    return
  }
  func.func @transform_0(%arg0: i32, %arg1: i32, %arg2: i32, %arg3: i32) -> (i32, i32, i32, i32) {
    %c0_i32 = arith.constant 0 : i32
    %c0_i32_0 = arith.constant 0 : i32
    return %arg0, %arg1, %arg2, %c0_i32 : i32, i32, i32, i32
  }
  func.func @transform_1(%arg0: i32, %arg1: i32, %arg2: i32, %arg3: i32) -> (i32, i32, i32, i32) {
    %c0_i32 = arith.constant 0 : i32
    %c0_i32_0 = arith.constant 0 : i32
    return %arg0, %arg1, %arg3, %c0_i32 : i32, i32, i32, i32
  }
  func.func @transform_2(%arg0: i32, %arg1: i32, %arg2: i32, %arg3: i32) -> (i32, i32, i32, i32) {
    %c0_i32 = arith.constant 0 : i32
    %c0_i32_0 = arith.constant 0 : i32
    return %arg0, %arg1, %arg3, %c0_i32 : i32, i32, i32, i32
  }
  func.func @transform_3(%arg0: i32, %arg1: i32, %arg2: i32, %arg3: i32) -> (i32, i32, i32, i32) {
    %c0_i32 = arith.constant 0 : i32
    %c0_i32_0 = arith.constant 0 : i32
    return %arg0, %arg1, %arg2, %c0_i32 : i32, i32, i32, i32
  }
}

module attributes {stable_mosaic.version = 11 : i64} {
  func.func @_ln_qkv_head_kernel(%arg0: i32, %arg1: i32, %arg2: i32, %arg3: memref<1x8x32xbf16, #tpu.memory_space<vmem>>, %arg4: memref<1x32xf32, #tpu.memory_space<vmem>>, %arg5: memref<1x32xf32, #tpu.memory_space<vmem>>, %arg6: memref<1x32x8xbf16, #tpu.memory_space<vmem>>, %arg7: memref<1x32x8xbf16, #tpu.memory_space<vmem>>, %arg8: memref<1x32x8xbf16, #tpu.memory_space<vmem>>, %arg9: memref<1x1x8x8xbf16, #tpu.memory_space<vmem>>, %arg10: memref<1x1x8x8xbf16, #tpu.memory_space<vmem>>, %arg11: memref<1x1x8x8xbf16, #tpu.memory_space<vmem>>, %arg12: memref<8x32xbf16, #tpu.memory_space<vmem>>) attributes {dimension_semantics = [#tpu.dimension_semantics<parallel>, #tpu.dimension_semantics<parallel>, #tpu.dimension_semantics<arbitrary>], iteration_bounds = array<i64: 2, 1, 4>, scalar_prefetch = 0 : i64, scratch_operands = 1 : i64, tpu.core_type = #tpu.core_type<tc>, window_params = [{transform_indices = @transform_0, window_bounds = array<i64: 1, 8, 32>}, {pipeline_mode = #tpu.pipeline_mode<synchronous>, transform_indices = @transform_1, window_bounds = array<i64: 1, 32>}, {pipeline_mode = #tpu.pipeline_mode<synchronous>, transform_indices = @transform_2, window_bounds = array<i64: 1, 32>}, {transform_indices = @transform_3, window_bounds = array<i64: 1, 32, 8>}, {transform_indices = @transform_4, window_bounds = array<i64: 1, 32, 8>}, {transform_indices = @transform_5, window_bounds = array<i64: 1, 32, 8>}, {transform_indices = @transform_6, window_bounds = array<i64: 1, 1, 8, 8>}, {transform_indices = @transform_7, window_bounds = array<i64: 1, 1, 8, 8>}, {transform_indices = @transform_8, window_bounds = array<i64: 1, 1, 8, 8>}]} {
    %c0_i32 = arith.constant 0 : i32
    %0 = arith.cmpi eq, %arg2, %c0_i32 : i32
    %1 = arith.extui %0 : i1 to i32
    %c0_i32_0 = arith.constant 0 : i32
    %2 = arith.cmpi ne, %1, %c0_i32_0 : i32
    scf.if %2 {
      %c0_25 = arith.constant 0 : index
      %c0_26 = arith.constant 0 : index
      %c0_27 = arith.constant 0 : index
      %25 = vector.load %arg3[%c0_25, %c0_26, %c0_27] : memref<1x8x32xbf16, #tpu.memory_space<vmem>>, vector<1x8x32xbf16>
      %26 = vector.shape_cast %25 : vector<1x8x32xbf16> to vector<8x32xbf16>
      %c0_28 = arith.constant 0 : index
      %c0_29 = arith.constant 0 : index
      %27 = vector.load %arg4[%c0_28, %c0_29] : memref<1x32xf32, #tpu.memory_space<vmem>>, vector<1x32xf32>
      %c0_30 = arith.constant 0 : index
      %c0_31 = arith.constant 0 : index
      %28 = vector.load %arg5[%c0_30, %c0_31] : memref<1x32xf32, #tpu.memory_space<vmem>>, vector<1x32xf32>
      %29 = arith.extf %26 : vector<8x32xbf16> to vector<8x32xf32>
      %cst_32 = arith.constant dense<0.000000e+00> : vector<8xf32>
      %30 = vector.multi_reduction <add>, %29, %cst_32 [1] : vector<8x32xf32> to vector<8xf32>
      %31 = vector.shape_cast %30 : vector<8xf32> to vector<8x1xf32>
      %cst_33 = arith.constant 3.200000e+01 : f32
      %32 = vector.broadcast %cst_33 : f32 to vector<8x1xf32>
      %33 = arith.divf %31, %32 : vector<8x1xf32>
      %34 = vector.broadcast %33 : vector<8x1xf32> to vector<8x32xf32>
      %35 = arith.subf %29, %34 : vector<8x32xf32>
      %36 = arith.mulf %35, %35 : vector<8x32xf32>
      %cst_34 = arith.constant dense<0.000000e+00> : vector<8xf32>
      %37 = vector.multi_reduction <add>, %36, %cst_34 [1] : vector<8x32xf32> to vector<8xf32>
      %38 = vector.shape_cast %37 : vector<8xf32> to vector<8x1xf32>
      %cst_35 = arith.constant 3.200000e+01 : f32
      %39 = vector.broadcast %cst_35 : f32 to vector<8x1xf32>
      %40 = arith.divf %38, %39 : vector<8x1xf32>
      %41 = vector.broadcast %33 : vector<8x1xf32> to vector<8x32xf32>
      %42 = arith.subf %29, %41 : vector<8x32xf32>
      %cst_36 = arith.constant 9.99999974E-6 : f32
      %43 = vector.broadcast %cst_36 : f32 to vector<8x1xf32>
      %44 = arith.addf %40, %43 : vector<8x1xf32>
      %45 = math.rsqrt %44 : vector<8x1xf32>
      %46 = vector.broadcast %45 : vector<8x1xf32> to vector<8x32xf32>
      %47 = arith.mulf %42, %46 : vector<8x32xf32>
      %48 = vector.broadcast %27 : vector<1x32xf32> to vector<8x32xf32>
      %49 = arith.mulf %47, %48 : vector<8x32xf32>
      %50 = vector.broadcast %28 : vector<1x32xf32> to vector<8x32xf32>
      %51 = arith.addf %49, %50 : vector<8x32xf32>
      %52 = arith.truncf %51 : vector<8x32xf32> to vector<8x32xbf16>
      %c0_37 = arith.constant 0 : index
      %c0_38 = arith.constant 0 : index
      %53 = vector.load %arg12[%c0_37, %c0_38] : memref<8x32xbf16, #tpu.memory_space<vmem>>, vector<8x32xbf16>
      tpu.vector_store %arg12[%c0_37, %c0_38], %52 {strides = array<i32>} : memref<8x32xbf16, #tpu.memory_space<vmem>>, vector<8x32xbf16>,
    } else {
    }
    %c0 = arith.constant 0 : index
    %c0_1 = arith.constant 0 : index
    %3 = vector.load %arg12[%c0, %c0_1] : memref<8x32xbf16, #tpu.memory_space<vmem>>, vector<8x32xbf16>
    %c0_2 = arith.constant 0 : index
    %c0_3 = arith.constant 0 : index
    %c0_4 = arith.constant 0 : index
    %4 = vector.load %arg6[%c0_2, %c0_3, %c0_4] : memref<1x32x8xbf16, #tpu.memory_space<vmem>>, vector<1x32x8xbf16>
    %5 = vector.shape_cast %4 : vector<1x32x8xbf16> to vector<32x8xbf16>
    %cst = arith.constant dense<0.000000e+00> : vector<8x8xf32>
    %6 = tpu.matmul %3, %5, %cst {dimension_numbers = #tpu.dot_dimension_numbers<[1], [0], [0], [1], [0, 0, 1, 1], [], []>} : vector<8x32xbf16>, vector<32x8xbf16>, vector<8x8xf32> -> vector<8x8xf32>
    %7 = arith.truncf %6 : vector<8x8xf32> to vector<8x8xbf16>
    %c0_5 = arith.constant 0 : index
    %c0_6 = arith.constant 0 : index
    %c0_7 = arith.constant 0 : index
    %c0_8 = arith.constant 0 : index
    %8 = vector.load %arg9[%c0_5, %c0_6, %c0_7, %c0_8] : memref<1x1x8x8xbf16, #tpu.memory_space<vmem>>, vector<1x1x8x8xbf16>
    %9 = vector.shape_cast %8 : vector<1x1x8x8xbf16> to vector<8x8xbf16>
    %10 = vector.shape_cast %7 : vector<8x8xbf16> to vector<1x1x8x8xbf16>
    tpu.vector_store %arg9[%c0_5, %c0_6, %c0_7, %c0_8], %10 {strides = array<i32>} : memref<1x1x8x8xbf16, #tpu.memory_space<vmem>>, vector<1x1x8x8xbf16>,
    %c0_9 = arith.constant 0 : index
    %c0_10 = arith.constant 0 : index
    %c0_11 = arith.constant 0 : index
    %11 = vector.load %arg7[%c0_9, %c0_10, %c0_11] : memref<1x32x8xbf16, #tpu.memory_space<vmem>>, vector<1x32x8xbf16>
    %12 = vector.shape_cast %11 : vector<1x32x8xbf16> to vector<32x8xbf16>
    %cst_12 = arith.constant dense<0.000000e+00> : vector<8x8xf32>
    %13 = tpu.matmul %3, %12, %cst_12 {dimension_numbers = #tpu.dot_dimension_numbers<[1], [0], [0], [1], [0, 0, 1, 1], [], []>} : vector<8x32xbf16>, vector<32x8xbf16>, vector<8x8xf32> -> vector<8x8xf32>
    %14 = arith.truncf %13 : vector<8x8xf32> to vector<8x8xbf16>
    %c0_13 = arith.constant 0 : index
    %c0_14 = arith.constant 0 : index
    %c0_15 = arith.constant 0 : index
    %c0_16 = arith.constant 0 : index
    %15 = vector.load %arg10[%c0_13, %c0_14, %c0_15, %c0_16] : memref<1x1x8x8xbf16, #tpu.memory_space<vmem>>, vector<1x1x8x8xbf16>
    %16 = vector.shape_cast %15 : vector<1x1x8x8xbf16> to vector<8x8xbf16>
    %17 = vector.shape_cast %14 : vector<8x8xbf16> to vector<1x1x8x8xbf16>
    tpu.vector_store %arg10[%c0_13, %c0_14, %c0_15, %c0_16], %17 {strides = array<i32>} : memref<1x1x8x8xbf16, #tpu.memory_space<vmem>>, vector<1x1x8x8xbf16>,
    %c0_17 = arith.constant 0 : index
    %c0_18 = arith.constant 0 : index
    %c0_19 = arith.constant 0 : index
    %18 = vector.load %arg8[%c0_17, %c0_18, %c0_19] : memref<1x32x8xbf16, #tpu.memory_space<vmem>>, vector<1x32x8xbf16>
    %19 = vector.shape_cast %18 : vector<1x32x8xbf16> to vector<32x8xbf16>
    %cst_20 = arith.constant dense<0.000000e+00> : vector<8x8xf32>
    %20 = tpu.matmul %3, %19, %cst_20 {dimension_numbers = #tpu.dot_dimension_numbers<[1], [0], [0], [1], [0, 0, 1, 1], [], []>} : vector<8x32xbf16>, vector<32x8xbf16>, vector<8x8xf32> -> vector<8x8xf32>
    %21 = arith.truncf %20 : vector<8x8xf32> to vector<8x8xbf16>
    %c0_21 = arith.constant 0 : index
    %c0_22 = arith.constant 0 : index
    %c0_23 = arith.constant 0 : index
    %c0_24 = arith.constant 0 : index
    %22 = vector.load %arg11[%c0_21, %c0_22, %c0_23, %c0_24] : memref<1x1x8x8xbf16, #tpu.memory_space<vmem>>, vector<1x1x8x8xbf16>
    %23 = vector.shape_cast %22 : vector<1x1x8x8xbf16> to vector<8x8xbf16>
    %24 = vector.shape_cast %21 : vector<8x8xbf16> to vector<1x1x8x8xbf16>
    tpu.vector_store %arg11[%c0_21, %c0_22, %c0_23, %c0_24], %24 {strides = array<i32>} : memref<1x1x8x8xbf16, #tpu.memory_space<vmem>>, vector<1x1x8x8xbf16>,
    return
  }
  func.func @transform_0(%arg0: i32, %arg1: i32, %arg2: i32) -> (i32, i32, i32) {
    %c0_i32 = arith.constant 0 : i32
    %c0_i32_0 = arith.constant 0 : i32
    return %arg0, %arg1, %c0_i32 : i32, i32, i32
  }
  func.func @transform_1(%arg0: i32, %arg1: i32, %arg2: i32) -> (i32, i32) {
    %c0_i32 = arith.constant 0 : i32
    %c0_i32_0 = arith.constant 0 : i32
    %c0_i32_1 = arith.constant 0 : i32
    return %c0_i32, %c0_i32_0 : i32, i32
  }
  func.func @transform_2(%arg0: i32, %arg1: i32, %arg2: i32) -> (i32, i32) {
    %c0_i32 = arith.constant 0 : i32
    %c0_i32_0 = arith.constant 0 : i32
    %c0_i32_1 = arith.constant 0 : i32
    return %c0_i32, %c0_i32_0 : i32, i32
  }
  func.func @transform_3(%arg0: i32, %arg1: i32, %arg2: i32) -> (i32, i32, i32) {
    %c0_i32 = arith.constant 0 : i32
    %c0_i32_0 = arith.constant 0 : i32
    %c0_i32_1 = arith.constant 0 : i32
    return %arg2, %c0_i32, %c0_i32_0 : i32, i32, i32
  }
  func.func @transform_4(%arg0: i32, %arg1: i32, %arg2: i32) -> (i32, i32, i32) {
    %c0_i32 = arith.constant 0 : i32
    %c0_i32_0 = arith.constant 0 : i32
    %c0_i32_1 = arith.constant 0 : i32
    return %arg2, %c0_i32, %c0_i32_0 : i32, i32, i32
  }
  func.func @transform_5(%arg0: i32, %arg1: i32, %arg2: i32) -> (i32, i32, i32) {
    %c0_i32 = arith.constant 0 : i32
    %c0_i32_0 = arith.constant 0 : i32
    %c0_i32_1 = arith.constant 0 : i32
    return %arg2, %c0_i32, %c0_i32_0 : i32, i32, i32
  }
  func.func @transform_6(%arg0: i32, %arg1: i32, %arg2: i32) -> (i32, i32, i32, i32) {
    %c0_i32 = arith.constant 0 : i32
    %c0_i32_0 = arith.constant 0 : i32
    return %arg0, %arg2, %arg1, %c0_i32 : i32, i32, i32, i32
  }
  func.func @transform_7(%arg0: i32, %arg1: i32, %arg2: i32) -> (i32, i32, i32, i32) {
    %c0_i32 = arith.constant 0 : i32
    %c0_i32_0 = arith.constant 0 : i32
    return %arg0, %arg2, %arg1, %c0_i32 : i32, i32, i32, i32
  }
  func.func @transform_8(%arg0: i32, %arg1: i32, %arg2: i32) -> (i32, i32, i32, i32) {
    %c0_i32 = arith.constant 0 : i32
    %c0_i32_0 = arith.constant 0 : i32
    return %arg0, %arg2, %arg1, %c0_i32 : i32, i32, i32, i32
  }
}

module attributes {stable_mosaic.version = 11 : i64} {
  func.func @_ln_q_head_kernel(%arg0: i32, %arg1: i32, %arg2: i32, %arg3: memref<1x8x32xbf16, #tpu.memory_space<vmem>>, %arg4: memref<1x32xf32, #tpu.memory_space<vmem>>, %arg5: memref<1x32xf32, #tpu.memory_space<vmem>>, %arg6: memref<1x32x8xbf16, #tpu.memory_space<vmem>>, %arg7: memref<1x1x8x8xbf16, #tpu.memory_space<vmem>>, %arg8: memref<8x32xbf16, #tpu.memory_space<vmem>>) attributes {dimension_semantics = [#tpu.dimension_semantics<parallel>, #tpu.dimension_semantics<parallel>, #tpu.dimension_semantics<arbitrary>], iteration_bounds = array<i64: 2, 1, 4>, scalar_prefetch = 0 : i64, scratch_operands = 1 : i64, tpu.core_type = #tpu.core_type<tc>, window_params = [{transform_indices = @transform_0, window_bounds = array<i64: 1, 8, 32>}, {pipeline_mode = #tpu.pipeline_mode<synchronous>, transform_indices = @transform_1, window_bounds = array<i64: 1, 32>}, {pipeline_mode = #tpu.pipeline_mode<synchronous>, transform_indices = @transform_2, window_bounds = array<i64: 1, 32>}, {transform_indices = @transform_3, window_bounds = array<i64: 1, 32, 8>}, {transform_indices = @transform_4, window_bounds = array<i64: 1, 1, 8, 8>}]} {
    %c0_i32 = arith.constant 0 : i32
    %0 = arith.cmpi eq, %arg2, %c0_i32 : i32
    %1 = arith.extui %0 : i1 to i32
    %c0_i32_0 = arith.constant 0 : i32
    %2 = arith.cmpi ne, %1, %c0_i32_0 : i32
    scf.if %2 {
      %c0_9 = arith.constant 0 : index
      %c0_10 = arith.constant 0 : index
      %c0_11 = arith.constant 0 : index
      %11 = vector.load %arg3[%c0_9, %c0_10, %c0_11] : memref<1x8x32xbf16, #tpu.memory_space<vmem>>, vector<1x8x32xbf16>
      %12 = vector.shape_cast %11 : vector<1x8x32xbf16> to vector<8x32xbf16>
      %c0_12 = arith.constant 0 : index
      %c0_13 = arith.constant 0 : index
      %13 = vector.load %arg4[%c0_12, %c0_13] : memref<1x32xf32, #tpu.memory_space<vmem>>, vector<1x32xf32>
      %c0_14 = arith.constant 0 : index
      %c0_15 = arith.constant 0 : index
      %14 = vector.load %arg5[%c0_14, %c0_15] : memref<1x32xf32, #tpu.memory_space<vmem>>, vector<1x32xf32>
      %15 = arith.extf %12 : vector<8x32xbf16> to vector<8x32xf32>
      %cst_16 = arith.constant dense<0.000000e+00> : vector<8xf32>
      %16 = vector.multi_reduction <add>, %15, %cst_16 [1] : vector<8x32xf32> to vector<8xf32>
      %17 = vector.shape_cast %16 : vector<8xf32> to vector<8x1xf32>
      %cst_17 = arith.constant 3.200000e+01 : f32
      %18 = vector.broadcast %cst_17 : f32 to vector<8x1xf32>
      %19 = arith.divf %17, %18 : vector<8x1xf32>
      %20 = vector.broadcast %19 : vector<8x1xf32> to vector<8x32xf32>
      %21 = arith.subf %15, %20 : vector<8x32xf32>
      %22 = arith.mulf %21, %21 : vector<8x32xf32>
      %cst_18 = arith.constant dense<0.000000e+00> : vector<8xf32>
      %23 = vector.multi_reduction <add>, %22, %cst_18 [1] : vector<8x32xf32> to vector<8xf32>
      %24 = vector.shape_cast %23 : vector<8xf32> to vector<8x1xf32>
      %cst_19 = arith.constant 3.200000e+01 : f32
      %25 = vector.broadcast %cst_19 : f32 to vector<8x1xf32>
      %26 = arith.divf %24, %25 : vector<8x1xf32>
      %27 = vector.broadcast %19 : vector<8x1xf32> to vector<8x32xf32>
      %28 = arith.subf %15, %27 : vector<8x32xf32>
      %cst_20 = arith.constant 9.99999974E-6 : f32
      %29 = vector.broadcast %cst_20 : f32 to vector<8x1xf32>
      %30 = arith.addf %26, %29 : vector<8x1xf32>
      %31 = math.rsqrt %30 : vector<8x1xf32>
      %32 = vector.broadcast %31 : vector<8x1xf32> to vector<8x32xf32>
      %33 = arith.mulf %28, %32 : vector<8x32xf32>
      %34 = vector.broadcast %13 : vector<1x32xf32> to vector<8x32xf32>
      %35 = arith.mulf %33, %34 : vector<8x32xf32>
      %36 = vector.broadcast %14 : vector<1x32xf32> to vector<8x32xf32>
      %37 = arith.addf %35, %36 : vector<8x32xf32>
      %38 = arith.truncf %37 : vector<8x32xf32> to vector<8x32xbf16>
      %c0_21 = arith.constant 0 : index
      %c0_22 = arith.constant 0 : index
      %39 = vector.load %arg8[%c0_21, %c0_22] : memref<8x32xbf16, #tpu.memory_space<vmem>>, vector<8x32xbf16>
      tpu.vector_store %arg8[%c0_21, %c0_22], %38 {strides = array<i32>} : memref<8x32xbf16, #tpu.memory_space<vmem>>, vector<8x32xbf16>,
    } else {
    }
    %c0 = arith.constant 0 : index
    %c0_1 = arith.constant 0 : index
    %3 = vector.load %arg8[%c0, %c0_1] : memref<8x32xbf16, #tpu.memory_space<vmem>>, vector<8x32xbf16>
    %c0_2 = arith.constant 0 : index
    %c0_3 = arith.constant 0 : index
    %c0_4 = arith.constant 0 : index
    %4 = vector.load %arg6[%c0_2, %c0_3, %c0_4] : memref<1x32x8xbf16, #tpu.memory_space<vmem>>, vector<1x32x8xbf16>
    %5 = vector.shape_cast %4 : vector<1x32x8xbf16> to vector<32x8xbf16>
    %cst = arith.constant dense<0.000000e+00> : vector<8x8xf32>
    %6 = tpu.matmul %3, %5, %cst {dimension_numbers = #tpu.dot_dimension_numbers<[1], [0], [0], [1], [0, 0, 1, 1], [], []>} : vector<8x32xbf16>, vector<32x8xbf16>, vector<8x8xf32> -> vector<8x8xf32>
    %7 = arith.truncf %6 : vector<8x8xf32> to vector<8x8xbf16>
    %c0_5 = arith.constant 0 : index
    %c0_6 = arith.constant 0 : index
    %c0_7 = arith.constant 0 : index
    %c0_8 = arith.constant 0 : index
    %8 = vector.load %arg7[%c0_5, %c0_6, %c0_7, %c0_8] : memref<1x1x8x8xbf16, #tpu.memory_space<vmem>>, vector<1x1x8x8xbf16>
    %9 = vector.shape_cast %8 : vector<1x1x8x8xbf16> to vector<8x8xbf16>
    %10 = vector.shape_cast %7 : vector<8x8xbf16> to vector<1x1x8x8xbf16>
    tpu.vector_store %arg7[%c0_5, %c0_6, %c0_7, %c0_8], %10 {strides = array<i32>} : memref<1x1x8x8xbf16, #tpu.memory_space<vmem>>, vector<1x1x8x8xbf16>,
    return
  }
  func.func @transform_0(%arg0: i32, %arg1: i32, %arg2: i32) -> (i32, i32, i32) {
    %c0_i32 = arith.constant 0 : i32
    %c0_i32_0 = arith.constant 0 : i32
    return %arg0, %arg1, %c0_i32 : i32, i32, i32
  }
  func.func @transform_1(%arg0: i32, %arg1: i32, %arg2: i32) -> (i32, i32) {
    %c0_i32 = arith.constant 0 : i32
    %c0_i32_0 = arith.constant 0 : i32
    %c0_i32_1 = arith.constant 0 : i32
    return %c0_i32, %c0_i32_0 : i32, i32
  }
  func.func @transform_2(%arg0: i32, %arg1: i32, %arg2: i32) -> (i32, i32) {
    %c0_i32 = arith.constant 0 : i32
    %c0_i32_0 = arith.constant 0 : i32
    %c0_i32_1 = arith.constant 0 : i32
    return %c0_i32, %c0_i32_0 : i32, i32
  }
  func.func @transform_3(%arg0: i32, %arg1: i32, %arg2: i32) -> (i32, i32, i32) {
    %c0_i32 = arith.constant 0 : i32
    %c0_i32_0 = arith.constant 0 : i32
    %c0_i32_1 = arith.constant 0 : i32
    return %arg2, %c0_i32, %c0_i32_0 : i32, i32, i32
  }
  func.func @transform_4(%arg0: i32, %arg1: i32, %arg2: i32) -> (i32, i32, i32, i32) {
    %c0_i32 = arith.constant 0 : i32
    %c0_i32_0 = arith.constant 0 : i32
    return %arg0, %arg2, %arg1, %c0_i32 : i32, i32, i32, i32
  }
}

module attributes {stable_mosaic.version = 11 : i64} {
  func.func @_out_proj_kernel(%arg0: i32, %arg1: i32, %arg2: memref<1x4x8x8xbf16, #tpu.memory_space<vmem>>, %arg3: memref<32x32xbf16, #tpu.memory_space<vmem>>, %arg4: memref<1x32xf32, #tpu.memory_space<vmem>>, %arg5: memref<1x8x32xbf16, #tpu.memory_space<vmem>>, %arg6: memref<1x8x32xbf16, #tpu.memory_space<vmem>>) attributes {dimension_semantics = [#tpu.dimension_semantics<parallel>, #tpu.dimension_semantics<parallel>], iteration_bounds = array<i64: 2, 1>, scalar_prefetch = 0 : i64, scratch_operands = 0 : i64, tpu.core_type = #tpu.core_type<tc>, window_params = [{transform_indices = @transform_0, window_bounds = array<i64: 1, 4, 8, 8>}, {pipeline_mode = #tpu.pipeline_mode<synchronous>, transform_indices = @transform_1, window_bounds = array<i64: 32, 32>}, {pipeline_mode = #tpu.pipeline_mode<synchronous>, transform_indices = @transform_2, window_bounds = array<i64: 1, 32>}, {transform_indices = @transform_3, window_bounds = array<i64: 1, 8, 32>}, {transform_indices = @transform_4, window_bounds = array<i64: 1, 8, 32>}]} {
    %c0 = arith.constant 0 : index
    %c0_0 = arith.constant 0 : index
    %c0_1 = arith.constant 0 : index
    %c0_2 = arith.constant 0 : index
    %0 = vector.load %arg2[%c0, %c0_0, %c0_1, %c0_2] : memref<1x4x8x8xbf16, #tpu.memory_space<vmem>>, vector<1x4x8x8xbf16>
    %1 = vector.shape_cast %0 : vector<1x4x8x8xbf16> to vector<4x8x8xbf16>
    %2 = vector.extract_strided_slice %1 {offsets = [0, 0, 0], sizes = [1, 8, 8], strides = [1, 1, 1]} : vector<4x8x8xbf16> to vector<1x8x8xbf16>
    %3 = vector.shape_cast %2 : vector<1x8x8xbf16> to vector<8x8xbf16>
    %4 = vector.extract_strided_slice %1 {offsets = [1, 0, 0], sizes = [1, 8, 8], strides = [1, 1, 1]} : vector<4x8x8xbf16> to vector<1x8x8xbf16>
    %5 = vector.shape_cast %4 : vector<1x8x8xbf16> to vector<8x8xbf16>
    %6 = vector.extract_strided_slice %1 {offsets = [2, 0, 0], sizes = [1, 8, 8], strides = [1, 1, 1]} : vector<4x8x8xbf16> to vector<1x8x8xbf16>
    %7 = vector.shape_cast %6 : vector<1x8x8xbf16> to vector<8x8xbf16>
    %8 = vector.extract_strided_slice %1 {offsets = [3, 0, 0], sizes = [1, 8, 8], strides = [1, 1, 1]} : vector<4x8x8xbf16> to vector<1x8x8xbf16>
    %9 = vector.shape_cast %8 : vector<1x8x8xbf16> to vector<8x8xbf16>
    %10 = tpu.concatenate %3, %5, %7, %9 in 1 : vector<8x8xbf16>, vector<8x8xbf16>, vector<8x8xbf16>, vector<8x8xbf16> -> vector<8x32xbf16>
    %c0_3 = arith.constant 0 : index
    %c0_4 = arith.constant 0 : index
    %11 = vector.load %arg3[%c0_3, %c0_4] : memref<32x32xbf16, #tpu.memory_space<vmem>>, vector<32x32xbf16>
    %cst = arith.constant dense<0.000000e+00> : vector<8x32xf32>
    %12 = tpu.matmul %10, %11, %cst {dimension_numbers = #tpu.dot_dimension_numbers<[1], [0], [0], [1], [0, 0, 1, 1], [], []>} : vector<8x32xbf16>, vector<32x32xbf16>, vector<8x32xf32> -> vector<8x32xf32>
    %c0_5 = arith.constant 0 : index
    %c0_6 = arith.constant 0 : index
    %13 = vector.load %arg4[%c0_5, %c0_6] : memref<1x32xf32, #tpu.memory_space<vmem>>, vector<1x32xf32>
    %14 = vector.broadcast %13 : vector<1x32xf32> to vector<8x32xf32>
    %15 = arith.addf %12, %14 : vector<8x32xf32>
    %c0_7 = arith.constant 0 : index
    %c0_8 = arith.constant 0 : index
    %c0_9 = arith.constant 0 : index
    %16 = vector.load %arg5[%c0_7, %c0_8, %c0_9] : memref<1x8x32xbf16, #tpu.memory_space<vmem>>, vector<1x8x32xbf16>
    %17 = vector.shape_cast %16 : vector<1x8x32xbf16> to vector<8x32xbf16>
    %18 = arith.extf %17 : vector<8x32xbf16> to vector<8x32xf32>
    %19 = arith.addf %15, %18 : vector<8x32xf32>
    %20 = arith.truncf %19 : vector<8x32xf32> to vector<8x32xbf16>
    %c0_10 = arith.constant 0 : index
    %c0_11 = arith.constant 0 : index
    %c0_12 = arith.constant 0 : index
    %21 = vector.load %arg6[%c0_10, %c0_11, %c0_12] : memref<1x8x32xbf16, #tpu.memory_space<vmem>>, vector<1x8x32xbf16>
    %22 = vector.shape_cast %21 : vector<1x8x32xbf16> to vector<8x32xbf16>
    %23 = vector.shape_cast %20 : vector<8x32xbf16> to vector<1x8x32xbf16>
    tpu.vector_store %arg6[%c0_10, %c0_11, %c0_12], %23 {strides = array<i32>} : memref<1x8x32xbf16, #tpu.memory_space<vmem>>, vector<1x8x32xbf16>,
    return
  }
  func.func @transform_0(%arg0: i32, %arg1: i32) -> (i32, i32, i32, i32) {
    %c0_i32 = arith.constant 0 : i32
    %c0_i32_0 = arith.constant 0 : i32
    %c0_i32_1 = arith.constant 0 : i32
    return %arg0, %c0_i32, %arg1, %c0_i32_0 : i32, i32, i32, i32
  }
  func.func @transform_1(%arg0: i32, %arg1: i32) -> (i32, i32) {
    %c0_i32 = arith.constant 0 : i32
    %c0_i32_0 = arith.constant 0 : i32
    %c0_i32_1 = arith.constant 0 : i32
    return %c0_i32, %c0_i32_0 : i32, i32
  }
  func.func @transform_2(%arg0: i32, %arg1: i32) -> (i32, i32) {
    %c0_i32 = arith.constant 0 : i32
    %c0_i32_0 = arith.constant 0 : i32
    %c0_i32_1 = arith.constant 0 : i32
    return %c0_i32, %c0_i32_0 : i32, i32
  }
  func.func @transform_3(%arg0: i32, %arg1: i32) -> (i32, i32, i32) {
    %c0_i32 = arith.constant 0 : i32
    %c0_i32_0 = arith.constant 0 : i32
    return %arg0, %arg1, %c0_i32 : i32, i32, i32
  }
  func.func @transform_4(%arg0: i32, %arg1: i32) -> (i32, i32, i32) {
    %c0_i32 = arith.constant 0 : i32
    %c0_i32_0 = arith.constant 0 : i32
    return %arg0, %arg1, %c0_i32 : i32, i32, i32
  }
}

module attributes {stable_mosaic.version = 11 : i64} {
  func.func @_kv_head_kernel(%arg0: i32, %arg1: i32, %arg2: i32, %arg3: memref<1x8x24xbf16, #tpu.memory_space<vmem>>, %arg4: memref<1x24x8xbf16, #tpu.memory_space<vmem>>, %arg5: memref<1x24x8xbf16, #tpu.memory_space<vmem>>, %arg6: memref<1x1x8x8xbf16, #tpu.memory_space<vmem>>, %arg7: memref<1x1x8x8xbf16, #tpu.memory_space<vmem>>) attributes {dimension_semantics = [#tpu.dimension_semantics<parallel>, #tpu.dimension_semantics<parallel>, #tpu.dimension_semantics<parallel>], iteration_bounds = array<i64: 2, 1, 4>, scalar_prefetch = 0 : i64, scratch_operands = 0 : i64, tpu.core_type = #tpu.core_type<tc>, window_params = [{transform_indices = @transform_0, window_bounds = array<i64: 1, 8, 24>}, {transform_indices = @transform_1, window_bounds = array<i64: 1, 24, 8>}, {transform_indices = @transform_2, window_bounds = array<i64: 1, 24, 8>}, {transform_indices = @transform_3, window_bounds = array<i64: 1, 1, 8, 8>}, {transform_indices = @transform_4, window_bounds = array<i64: 1, 1, 8, 8>}]} {
    %c0 = arith.constant 0 : index
    %c0_0 = arith.constant 0 : index
    %c0_1 = arith.constant 0 : index
    %0 = vector.load %arg3[%c0, %c0_0, %c0_1] : memref<1x8x24xbf16, #tpu.memory_space<vmem>>, vector<1x8x24xbf16>
    %1 = vector.shape_cast %0 : vector<1x8x24xbf16> to vector<8x24xbf16>
    %c0_2 = arith.constant 0 : index
    %c0_3 = arith.constant 0 : index
    %c0_4 = arith.constant 0 : index
    %2 = vector.load %arg4[%c0_2, %c0_3, %c0_4] : memref<1x24x8xbf16, #tpu.memory_space<vmem>>, vector<1x24x8xbf16>
    %3 = vector.shape_cast %2 : vector<1x24x8xbf16> to vector<24x8xbf16>
    %cst = arith.constant dense<0.000000e+00> : vector<8x8xf32>
    %4 = tpu.matmul %1, %3, %cst {dimension_numbers = #tpu.dot_dimension_numbers<[1], [0], [0], [1], [0, 0, 1, 1], [], []>} : vector<8x24xbf16>, vector<24x8xbf16>, vector<8x8xf32> -> vector<8x8xf32>
    %5 = arith.truncf %4 : vector<8x8xf32> to vector<8x8xbf16>
    %c0_5 = arith.constant 0 : index
    %c0_6 = arith.constant 0 : index
    %c0_7 = arith.constant 0 : index
    %c0_8 = arith.constant 0 : index
    %6 = vector.load %arg6[%c0_5, %c0_6, %c0_7, %c0_8] : memref<1x1x8x8xbf16, #tpu.memory_space<vmem>>, vector<1x1x8x8xbf16>
    %7 = vector.shape_cast %6 : vector<1x1x8x8xbf16> to vector<8x8xbf16>
    %8 = vector.shape_cast %5 : vector<8x8xbf16> to vector<1x1x8x8xbf16>
    tpu.vector_store %arg6[%c0_5, %c0_6, %c0_7, %c0_8], %8 {strides = array<i32>} : memref<1x1x8x8xbf16, #tpu.memory_space<vmem>>, vector<1x1x8x8xbf16>,
    %c0_9 = arith.constant 0 : index
    %c0_10 = arith.constant 0 : index
    %c0_11 = arith.constant 0 : index
    %9 = vector.load %arg5[%c0_9, %c0_10, %c0_11] : memref<1x24x8xbf16, #tpu.memory_space<vmem>>, vector<1x24x8xbf16>
    %10 = vector.shape_cast %9 : vector<1x24x8xbf16> to vector<24x8xbf16>
    %cst_12 = arith.constant dense<0.000000e+00> : vector<8x8xf32>
    %11 = tpu.matmul %1, %10, %cst_12 {dimension_numbers = #tpu.dot_dimension_numbers<[1], [0], [0], [1], [0, 0, 1, 1], [], []>} : vector<8x24xbf16>, vector<24x8xbf16>, vector<8x8xf32> -> vector<8x8xf32>
    %12 = arith.truncf %11 : vector<8x8xf32> to vector<8x8xbf16>
    %c0_13 = arith.constant 0 : index
    %c0_14 = arith.constant 0 : index
    %c0_15 = arith.constant 0 : index
    %c0_16 = arith.constant 0 : index
    %13 = vector.load %arg7[%c0_13, %c0_14, %c0_15, %c0_16] : memref<1x1x8x8xbf16, #tpu.memory_space<vmem>>, vector<1x1x8x8xbf16>
    %14 = vector.shape_cast %13 : vector<1x1x8x8xbf16> to vector<8x8xbf16>
    %15 = vector.shape_cast %12 : vector<8x8xbf16> to vector<1x1x8x8xbf16>
    tpu.vector_store %arg7[%c0_13, %c0_14, %c0_15, %c0_16], %15 {strides = array<i32>} : memref<1x1x8x8xbf16, #tpu.memory_space<vmem>>, vector<1x1x8x8xbf16>,
    return
  }
  func.func @transform_0(%arg0: i32, %arg1: i32, %arg2: i32) -> (i32, i32, i32) {
    %c0_i32 = arith.constant 0 : i32
    %c0_i32_0 = arith.constant 0 : i32
    return %arg0, %arg1, %c0_i32 : i32, i32, i32
  }
  func.func @transform_1(%arg0: i32, %arg1: i32, %arg2: i32) -> (i32, i32, i32) {
    %c0_i32 = arith.constant 0 : i32
    %c0_i32_0 = arith.constant 0 : i32
    %c0_i32_1 = arith.constant 0 : i32
    return %arg2, %c0_i32, %c0_i32_0 : i32, i32, i32
  }
  func.func @transform_2(%arg0: i32, %arg1: i32, %arg2: i32) -> (i32, i32, i32) {
    %c0_i32 = arith.constant 0 : i32
    %c0_i32_0 = arith.constant 0 : i32
    %c0_i32_1 = arith.constant 0 : i32
    return %arg2, %c0_i32, %c0_i32_0 : i32, i32, i32
  }
  func.func @transform_3(%arg0: i32, %arg1: i32, %arg2: i32) -> (i32, i32, i32, i32) {
    %c0_i32 = arith.constant 0 : i32
    %c0_i32_0 = arith.constant 0 : i32
    return %arg0, %arg2, %arg1, %c0_i32 : i32, i32, i32, i32
  }
  func.func @transform_4(%arg0: i32, %arg1: i32, %arg2: i32) -> (i32, i32, i32, i32) {
    %c0_i32 = arith.constant 0 : i32
    %c0_i32_0 = arith.constant 0 : i32
    return %arg0, %arg2, %arg1, %c0_i32 : i32, i32, i32, i32
  }
}

module attributes {stable_mosaic.version = 11 : i64} {
  func.func @_ln_geglu_ff_kernel(%arg0: i32, %arg1: i32, %arg2: memref<16x32xbf16, #tpu.memory_space<vmem>>, %arg3: memref<1x32xf32, #tpu.memory_space<vmem>>, %arg4: memref<1x32xf32, #tpu.memory_space<vmem>>, %arg5: memref<32x128xbf16, #tpu.memory_space<vmem>>, %arg6: memref<1x128xf32, #tpu.memory_space<vmem>>, %arg7: memref<32x128xbf16, #tpu.memory_space<vmem>>, %arg8: memref<1x128xf32, #tpu.memory_space<vmem>>, %arg9: memref<128x32xbf16, #tpu.memory_space<vmem>>, %arg10: memref<1x32xf32, #tpu.memory_space<vmem>>, %arg11: memref<16x32xbf16, #tpu.memory_space<vmem>>, %arg12: memref<16x32xbf16, #tpu.memory_space<vmem>>, %arg13: memref<16x32xf32, #tpu.memory_space<vmem>>) attributes {dimension_semantics = [#tpu.dimension_semantics<parallel>, #tpu.dimension_semantics<arbitrary>], iteration_bounds = array<i64: 1, 1>, scalar_prefetch = 0 : i64, scratch_operands = 2 : i64, tpu.core_type = #tpu.core_type<tc>, window_params = [{transform_indices = @transform_0, window_bounds = array<i64: 16, 32>}, {pipeline_mode = #tpu.pipeline_mode<synchronous>, transform_indices = @transform_1, window_bounds = array<i64: 1, 32>}, {pipeline_mode = #tpu.pipeline_mode<synchronous>, transform_indices = @transform_2, window_bounds = array<i64: 1, 32>}, {transform_indices = @transform_3, window_bounds = array<i64: 32, 128>}, {transform_indices = @transform_4, window_bounds = array<i64: 1, 128>}, {transform_indices = @transform_5, window_bounds = array<i64: 32, 128>}, {transform_indices = @transform_6, window_bounds = array<i64: 1, 128>}, {transform_indices = @transform_7, window_bounds = array<i64: 128, 32>}, {pipeline_mode = #tpu.pipeline_mode<synchronous>, transform_indices = @transform_8, window_bounds = array<i64: 1, 32>}, {transform_indices = @transform_9, window_bounds = array<i64: 16, 32>}]} {
    %c0_i32 = arith.constant 0 : i32
    %0 = arith.cmpi eq, %arg1, %c0_i32 : i32
    %1 = arith.extui %0 : i1 to i32
    %c0_i32_0 = arith.constant 0 : i32
    %2 = arith.cmpi ne, %1, %c0_i32_0 : i32
    scf.if %2 {
      %c0_23 = arith.constant 0 : index
      %c0_24 = arith.constant 0 : index
      %32 = vector.load %arg2[%c0_23, %c0_24] : memref<16x32xbf16, #tpu.memory_space<vmem>>, vector<16x32xbf16>
      %c0_25 = arith.constant 0 : index
      %c0_26 = arith.constant 0 : index
      %33 = vector.load %arg3[%c0_25, %c0_26] : memref<1x32xf32, #tpu.memory_space<vmem>>, vector<1x32xf32>
      %c0_27 = arith.constant 0 : index
      %c0_28 = arith.constant 0 : index
      %34 = vector.load %arg4[%c0_27, %c0_28] : memref<1x32xf32, #tpu.memory_space<vmem>>, vector<1x32xf32>
      %35 = arith.extf %32 : vector<16x32xbf16> to vector<16x32xf32>
      %cst_29 = arith.constant dense<0.000000e+00> : vector<16xf32>
      %36 = vector.multi_reduction <add>, %35, %cst_29 [1] : vector<16x32xf32> to vector<16xf32>
      %37 = vector.shape_cast %36 : vector<16xf32> to vector<16x1xf32>
      %cst_30 = arith.constant 3.200000e+01 : f32
      %38 = vector.broadcast %cst_30 : f32 to vector<16x1xf32>
      %39 = arith.divf %37, %38 : vector<16x1xf32>
      %40 = vector.broadcast %39 : vector<16x1xf32> to vector<16x32xf32>
      %41 = arith.subf %35, %40 : vector<16x32xf32>
      %42 = arith.mulf %41, %41 : vector<16x32xf32>
      %cst_31 = arith.constant dense<0.000000e+00> : vector<16xf32>
      %43 = vector.multi_reduction <add>, %42, %cst_31 [1] : vector<16x32xf32> to vector<16xf32>
      %44 = vector.shape_cast %43 : vector<16xf32> to vector<16x1xf32>
      %cst_32 = arith.constant 3.200000e+01 : f32
      %45 = vector.broadcast %cst_32 : f32 to vector<16x1xf32>
      %46 = arith.divf %44, %45 : vector<16x1xf32>
      %47 = vector.broadcast %39 : vector<16x1xf32> to vector<16x32xf32>
      %48 = arith.subf %35, %47 : vector<16x32xf32>
      %cst_33 = arith.constant 9.99999974E-6 : f32
      %49 = vector.broadcast %cst_33 : f32 to vector<16x1xf32>
      %50 = arith.addf %46, %49 : vector<16x1xf32>
      %51 = math.rsqrt %50 : vector<16x1xf32>
      %52 = vector.broadcast %51 : vector<16x1xf32> to vector<16x32xf32>
      %53 = arith.mulf %48, %52 : vector<16x32xf32>
      %54 = vector.broadcast %33 : vector<1x32xf32> to vector<16x32xf32>
      %55 = arith.mulf %53, %54 : vector<16x32xf32>
      %56 = vector.broadcast %34 : vector<1x32xf32> to vector<16x32xf32>
      %57 = arith.addf %55, %56 : vector<16x32xf32>
      %58 = arith.truncf %57 : vector<16x32xf32> to vector<16x32xbf16>
      %c0_34 = arith.constant 0 : index
      %c0_35 = arith.constant 0 : index
      %59 = vector.load %arg12[%c0_34, %c0_35] : memref<16x32xbf16, #tpu.memory_space<vmem>>, vector<16x32xbf16>
      tpu.vector_store %arg12[%c0_34, %c0_35], %58 {strides = array<i32>} : memref<16x32xbf16, #tpu.memory_space<vmem>>, vector<16x32xbf16>,
      %cst_36 = arith.constant 0.000000e+00 : f32
      %60 = vector.broadcast %cst_36 : f32 to vector<16x32xf32>
      %c0_37 = arith.constant 0 : index
      %c0_38 = arith.constant 0 : index
      %61 = vector.load %arg13[%c0_37, %c0_38] : memref<16x32xf32, #tpu.memory_space<vmem>>, vector<16x32xf32>
      tpu.vector_store %arg13[%c0_37, %c0_38], %60 {strides = array<i32>} : memref<16x32xf32, #tpu.memory_space<vmem>>, vector<16x32xf32>,
    } else {
    }
    %c0 = arith.constant 0 : index
    %c0_1 = arith.constant 0 : index
    %3 = vector.load %arg12[%c0, %c0_1] : memref<16x32xbf16, #tpu.memory_space<vmem>>, vector<16x32xbf16>
    %c0_2 = arith.constant 0 : index
    %c0_3 = arith.constant 0 : index
    %4 = vector.load %arg5[%c0_2, %c0_3] : memref<32x128xbf16, #tpu.memory_space<vmem>>, vector<32x128xbf16>
    %cst = arith.constant dense<0.000000e+00> : vector<16x128xf32>
    %5 = tpu.matmul %3, %4, %cst {dimension_numbers = #tpu.dot_dimension_numbers<[1], [0], [0], [1], [0, 0, 1, 1], [], []>} : vector<16x32xbf16>, vector<32x128xbf16>, vector<16x128xf32> -> vector<16x128xf32>
    %c0_4 = arith.constant 0 : index
    %c0_5 = arith.constant 0 : index
    %6 = vector.load %arg6[%c0_4, %c0_5] : memref<1x128xf32, #tpu.memory_space<vmem>>, vector<1x128xf32>
    %7 = vector.broadcast %6 : vector<1x128xf32> to vector<16x128xf32>
    %8 = arith.addf %5, %7 : vector<16x128xf32>
    %c0_6 = arith.constant 0 : index
    %c0_7 = arith.constant 0 : index
    %9 = vector.load %arg7[%c0_6, %c0_7] : memref<32x128xbf16, #tpu.memory_space<vmem>>, vector<32x128xbf16>
    %cst_8 = arith.constant dense<0.000000e+00> : vector<16x128xf32>
    %10 = tpu.matmul %3, %9, %cst_8 {dimension_numbers = #tpu.dot_dimension_numbers<[1], [0], [0], [1], [0, 0, 1, 1], [], []>} : vector<16x32xbf16>, vector<32x128xbf16>, vector<16x128xf32> -> vector<16x128xf32>
    %c0_9 = arith.constant 0 : index
    %c0_10 = arith.constant 0 : index
    %11 = vector.load %arg8[%c0_9, %c0_10] : memref<1x128xf32, #tpu.memory_space<vmem>>, vector<1x128xf32>
    %12 = vector.broadcast %11 : vector<1x128xf32> to vector<16x128xf32>
    %13 = arith.addf %10, %12 : vector<16x128xf32>
    %cst_11 = arith.constant 5.000000e-01 : f32
    %14 = vector.broadcast %cst_11 : f32 to vector<16x128xf32>
    %15 = arith.mulf %14, %13 : vector<16x128xf32>
    %cst_12 = arith.constant 0.707106769 : f32
    %16 = vector.broadcast %cst_12 : f32 to vector<16x128xf32>
    %17 = arith.mulf %13, %16 : vector<16x128xf32>
    %18 = math.erf %17 : vector<16x128xf32>
    %cst_13 = arith.constant 1.000000e+00 : f32
    %19 = vector.broadcast %cst_13 : f32 to vector<16x128xf32>
    %20 = arith.addf %19, %18 : vector<16x128xf32>
    %21 = arith.mulf %15, %20 : vector<16x128xf32>
    %22 = arith.mulf %8, %21 : vector<16x128xf32>
    %23 = arith.truncf %22 : vector<16x128xf32> to vector<16x128xbf16>
    %c0_14 = arith.constant 0 : index
    %c0_15 = arith.constant 0 : index
    %24 = vector.load %arg13[%c0_14, %c0_15] : memref<16x32xf32, #tpu.memory_space<vmem>>, vector<16x32xf32>
    %c0_16 = arith.constant 0 : index
    %c0_17 = arith.constant 0 : index
    %25 = vector.load %arg9[%c0_16, %c0_17] : memref<128x32xbf16, #tpu.memory_space<vmem>>, vector<128x32xbf16>
    %cst_18 = arith.constant dense<0.000000e+00> : vector<16x32xf32>
    %26 = tpu.matmul %23, %25, %cst_18 {dimension_numbers = #tpu.dot_dimension_numbers<[1], [0], [0], [1], [0, 0, 1, 1], [], []>} : vector<16x128xbf16>, vector<128x32xbf16>, vector<16x32xf32> -> vector<16x32xf32>
    %27 = arith.addf %24, %26 : vector<16x32xf32>
    %c0_19 = arith.constant 0 : index
    %c0_20 = arith.constant 0 : index
    %28 = vector.load %arg13[%c0_19, %c0_20] : memref<16x32xf32, #tpu.memory_space<vmem>>, vector<16x32xf32>
    tpu.vector_store %arg13[%c0_19, %c0_20], %27 {strides = array<i32>} : memref<16x32xf32, #tpu.memory_space<vmem>>, vector<16x32xf32>,
    %c0_i32_21 = arith.constant 0 : i32
    %29 = arith.cmpi eq, %arg1, %c0_i32_21 : i32
    %30 = arith.extui %29 : i1 to i32
    %c0_i32_22 = arith.constant 0 : i32
    %31 = arith.cmpi ne, %30, %c0_i32_22 : i32
    scf.if %31 {
      %c0_23 = arith.constant 0 : index
      %c0_24 = arith.constant 0 : index
      %32 = vector.load %arg13[%c0_23, %c0_24] : memref<16x32xf32, #tpu.memory_space<vmem>>, vector<16x32xf32>
      %c0_25 = arith.constant 0 : index
      %c0_26 = arith.constant 0 : index
      %33 = vector.load %arg10[%c0_25, %c0_26] : memref<1x32xf32, #tpu.memory_space<vmem>>, vector<1x32xf32>
      %34 = vector.broadcast %33 : vector<1x32xf32> to vector<16x32xf32>
      %35 = arith.addf %32, %34 : vector<16x32xf32>
      %c0_27 = arith.constant 0 : index
      %c0_28 = arith.constant 0 : index
      %36 = vector.load %arg2[%c0_27, %c0_28] : memref<16x32xbf16, #tpu.memory_space<vmem>>, vector<16x32xbf16>
      %37 = arith.extf %36 : vector<16x32xbf16> to vector<16x32xf32>
      %38 = arith.addf %35, %37 : vector<16x32xf32>
      %39 = arith.truncf %38 : vector<16x32xf32> to vector<16x32xbf16>
      %c0_29 = arith.constant 0 : index
      %c0_30 = arith.constant 0 : index
      %40 = vector.load %arg11[%c0_29, %c0_30] : memref<16x32xbf16, #tpu.memory_space<vmem>>, vector<16x32xbf16>
      tpu.vector_store %arg11[%c0_29, %c0_30], %39 {strides = array<i32>} : memref<16x32xbf16, #tpu.memory_space<vmem>>, vector<16x32xbf16>,
    } else {
    }
    return
  }
  func.func @transform_0(%arg0: i32, %arg1: i32) -> (i32, i32) {
    %c0_i32 = arith.constant 0 : i32
    %c0_i32_0 = arith.constant 0 : i32
    return %arg0, %c0_i32 : i32, i32
  }
  func.func @transform_1(%arg0: i32, %arg1: i32) -> (i32, i32) {
    %c0_i32 = arith.constant 0 : i32
    %c0_i32_0 = arith.constant 0 : i32
    %c0_i32_1 = arith.constant 0 : i32
    return %c0_i32, %c0_i32_0 : i32, i32
  }
  func.func @transform_2(%arg0: i32, %arg1: i32) -> (i32, i32) {
    %c0_i32 = arith.constant 0 : i32
    %c0_i32_0 = arith.constant 0 : i32
    %c0_i32_1 = arith.constant 0 : i32
    return %c0_i32, %c0_i32_0 : i32, i32
  }
  func.func @transform_3(%arg0: i32, %arg1: i32) -> (i32, i32) {
    %c0_i32 = arith.constant 0 : i32
    %c0_i32_0 = arith.constant 0 : i32
    return %c0_i32, %arg1 : i32, i32
  }
  func.func @transform_4(%arg0: i32, %arg1: i32) -> (i32, i32) {
    %c0_i32 = arith.constant 0 : i32
    %c0_i32_0 = arith.constant 0 : i32
    return %c0_i32, %arg1 : i32, i32
  }
  func.func @transform_5(%arg0: i32, %arg1: i32) -> (i32, i32) {
    %c0_i32 = arith.constant 0 : i32
    %c0_i32_0 = arith.constant 0 : i32
    return %c0_i32, %arg1 : i32, i32
  }
  func.func @transform_6(%arg0: i32, %arg1: i32) -> (i32, i32) {
    %c0_i32 = arith.constant 0 : i32
    %c0_i32_0 = arith.constant 0 : i32
    return %c0_i32, %arg1 : i32, i32
  }
  func.func @transform_7(%arg0: i32, %arg1: i32) -> (i32, i32) {
    %c0_i32 = arith.constant 0 : i32
    %c0_i32_0 = arith.constant 0 : i32
    return %arg1, %c0_i32 : i32, i32
  }
  func.func @transform_8(%arg0: i32, %arg1: i32) -> (i32, i32) {
    %c0_i32 = arith.constant 0 : i32
    %c0_i32_0 = arith.constant 0 : i32
    %c0_i32_1 = arith.constant 0 : i32
    return %c0_i32, %c0_i32_0 : i32, i32
  }
  func.func @transform_9(%arg0: i32, %arg1: i32) -> (i32, i32) {
    %c0_i32 = arith.constant 0 : i32
    %c0_i32_0 = arith.constant 0 : i32
    return %arg0, %c0_i32 : i32, i32
  }
}

</mosaic_0001>

<bundles_post_ra>
// kernel: basic_transformer_block.9
= control target key start
LH: loop header
LB: loop body
LE: loop exit
PB: predicated region body
PF: predicated region fallthrough
CT: control target
= control target key end

     0   :  { %s702_s12 = smov 0   ;;  %s704_s13 = smov 0   ;;  %s776_s0 = inlined_call_operand.vmem [shape: bf16[2,4,8,8], index: 0, kind: input, shape index: {}]   ;;  %s777_s1 = inlined_call_operand.vmem [shape: bf16[2,4,8,8], index: 1, kind: input, shape index: {}]   ;;  %s778_s2 = inlined_call_operand.vmem [shape: bf16[2,4,8,8], index: 2, kind: input, shape index: {}]   ;;  %s779_s3 = inlined_call_operand.vmem [shape: bf16[2,4,8,8], index: 3, kind: output, shape index: {}]  }
   0x1   :  { %s706_s14 = smov 0   ;;  %s708_s15 = smov 0  }
   0x2   :  { %s710_s16 = smov 0  }
   0x3 LB: > { %s35_s17 = sadd.s32 1, %s669_s14  ;;  %s39_s18 = sadd.s32 1, %s673_s15  ;;  %s677_s16 = sphi %s710_s16, %s13_s16   ;;  %s673_s15 = sphi %s708_s15, %s783_s15   ;;  %s669_s14 = sphi %s706_s14, %s782_s14   ;;  %s665_s13 = sphi %s704_s13, %s781_s13   ;;  %s661_s12 = sphi %s702_s12, %s780_s12  }
   0x4   : > { %p37_p0 = scmp.ge.s32.totalorder %s35_s17, 4  ;;  %p574_p1 = scmp.ge.s32.totalorder %s677_s16, 1 }
   0x5   : > { %p217_p2 = scmp.lt.s32.totalorder %s677_s16, 9 }
   0x6   : > { %s785_s17 = smov (%p37_p0, %s35_s17), 0  ;;  %s787_s18 = smov (!%p37_p0, %s39_s18), %s673_s15 }
   0x7   : > { %p218_p3 = pnand %p574_p1, %p217_p2  ;;  %p41_p4 = scmp.ge.s32.totalorder %s787_s18, 2 }
   0x8   : > { %p275_p5 = scmp.lt.s32.totalorder (!%p218_p3), %s665_s13, 1  ;;  %p277_p6 = scmp.lt.s32.totalorder (!%p218_p3), %s661_s12, 3 }
   0x9   : > { %s789_s18 = smov (%p41_p4, %s787_s18), 0  ;;  %221 = sbr.rel (%p218_p3) target bundleno = 631 (0x277), region = 32 }
   0xe   : > { %s791_s13 = smov (!%p275_p5, %s665_s13), 1  ;;  %s793_s12 = smov (!%p277_p6, %s661_s12), 3  ;;  %vm327_vm0 = vcmask 64512   ;;  %vm324_vm1 = vcmask 7168   ;;  %v679_v3 = vmov -inf   ;;  %v680_v8 = vmov 0  }
   0xf   : > { %s575_s19 = sshll.u32 %s791_s13, 2  ;;  %325 = vst.msk [vmem:[#allocation2] sm:$0xff] %vm324_vm1, %v679_v3  ;;  %630 = vset.pattern.permute.xlu0 %v680_v8  ;;  %631 = vset.pattern.permute.xlu1 %v680_v8  ;;  %v681_v9 = vmov 0.0   ;;  %vm388_vm2 = vcmask 1043456   ;;  %vm421_vm3 = vcmask 60416  }
  0x10   : > { %s283_s20 = sadd.s32 %s575_s19, %s793_s12  ;;  %632 = vset.pattern.permute.xlu2 %v680_v8  ;;  %326 = vst.msk [vmem:[#allocation3] sm:$0xff] %vm324_vm1, %v681_v9 }
  0x11   : > { %s732_s21 = sshll.u32 %s283_s20, 2  ;;  %328 = vst.msk [vmem:[#allocation4] sm:$0xff] %vm327_vm0, %v681_v9 }
  0x12   : > { %s296_s24 = scalar_lea.vmem %s777_s1, %s732_s21  ;;  %s285_s27 = scalar_lea.vmem %s776_s0, %s732_s21 }
  0x13   : > { %v330_v0 = vld [vmem:[%s296_s24] sm:$0xf]  ;;  %s307_s30 = scalar_lea.vmem %s778_s2, %s732_s21  ;;  %s318_s6 = scalar_lea.vmem %s779_s3, %s732_s21 }
  0x14   : > { %v337_v1 = vsel %vm327_vm0, %v330_v0, 0  ;;  %v329_v2 = vld [vmem:[%s285_s27] sm:$0xf] }
  0x15   : > { %346 = vmatpush.bf16.xpose.msra.mxu0 %v337_v1  ;;  %v331_v14 = vld [vmem:[%s307_s30] sm:$0xf] }
  0x16   : > { %v353_v10 = vld [vmem:[#allocation2] sm:$0xff]  ;;  %v390_v15 = vsel %vm388_vm2, %v331_v14, 0 }
  0x17   : > { %399 = vmatpush.bf16.msra.mxu1 %v390_v15  ;;  %v369_v24 = vld [vmem:[#allocation3] sm:$0xff] }
  0x18   : > { %v377_v32 = vld [vmem:[#allocation4] sm:$0xff] }
  0x1c   : > { %583 = vmatmul.msk.bf16.vlgmr.msra.gmra.mxu0 %vm327_vm0, %v329_v2 }
  0x99   : > { %v348_v4 = vpop.f32.mrf.mxu0 }
  0x9a   : > { %v352_v5 = vmul.f32 0.35355338, %v348_v4 }
  0x9c   : > { %v354_v6 = vsel %vm327_vm0, %v352_v5, -inf }
  0x9d   : > { %355 = vmax.xlane.f32.xlu0 %v354_v6 }
  0xa1   : > { %v350_v7 = vpop.f32.mrf.mxu0 }
 0x110   : > { %v356_v11 = vpop.xlane.xlu0 %355 }
 0x111   : > { %v357_v12 = vmax.f32 %v353_v10, %v356_v11 }
 0x113   : > { %v358_v13 = vsub.f32 %v353_v10, %v357_v12  ;;  %407 = vst.msk [vmem:[#allocation2] sm:$0xff] %vm324_vm1, %v357_v12  ;;  %363 = vperm.xlu0 %630, %v357_v12  }
 0x115   : > { %v359_v22 = vmul.f32 1.442695, %v358_v13 }
 0x185   : > { %v364_v16 = vpop.permute.xlu0 %363 }
 0x186   : > { %v366_v17 = vsub.f32 %v352_v5, %v364_v16 }
 0x188   : > { %v367_v18 = vmul.f32 1.442695, %v366_v17 }
 0x18a   : > { %633 = vpow2.f32 %v367_v18 }
 0x18b   : > { %635 = vpow2.f32 %v359_v22 }
 0x190   : > { %v634_v19 = vpop.eup %633 }
 0x191   : > { %v371_v20 = vsel %vm327_vm0, %v634_v19, 0.0  ;;  %v384_v21 = vpack.c.bf16 %v634_v19, %v634_v19  ;;  %v636_v23 = vpop.eup %635 }
 0x192   : > { %372 = vadd.xlane.f32.xlu1 %v371_v20  ;;  %v370_v25 = vmul.f32 %v636_v23, %v369_v24 }
 0x193   : > { %584 = vmatmul.msk.bf16.vlgmr.msra.gmra.mxu1 %vm327_vm0, %v384_v21 }
 0x1ab   : > { %380 = vperm.xlu1 %631, %v636_v23  }
 0x205   : > { %v373_v26 = vpop.xlane.xlu1 %372 }
 0x206   : > { %v374_v27 = vadd.f32 %v373_v26, %v370_v25 }
 0x208   : > { %376 = vst.msk [vmem:[#allocation3] sm:$0xff] %vm324_vm1, %v374_v27 }
 0x20f   : > { %v411_v28 = vld [vmem:[#allocation3] sm:$0xff] }
 0x210   : > { %v401_v29 = vpop.f32.mrf.mxu1  ;;  %637 = vrcp.f32 %v411_v28 }
 0x216   : > { %v638_v30 = vpop.eup %637 }
 0x217   : > { %416 = vperm.xlu2 %632, %v638_v30  }
 0x218   : > { %v403_v31 = vpop.f32.mrf.mxu1 }
 0x21d   : > { %v381_v33 = vpop.permute.xlu1 %380 }
 0x21e   : > { %v383_v34 = vmul.f32 %v381_v33, %v377_v32 }
 0x220   : > { %v405_v35 = vadd.f32 %v401_v29, %v383_v34 }
 0x222   : > { %406 = vst.msk [vmem:[#allocation4] sm:$0xff] %vm327_vm0, %v405_v35 }
 0x229   : > { %v413_v36 = vld [vmem:[#allocation4] sm:$0xff] }
 0x271   : > { %v417_v37 = vpop.permute.xlu2 %416 }
 0x272   : > { %v419_v38 = vmul.f32 %v417_v37, %v413_v36 }
 0x274   : > { %v420_v39 = vpack.c.bf16 %v419_v38, %v419_v38 }
 0x276   : > { %422 = vst.msk [vmem:[%s318_s6] sm:$0xf] %vm421_vm3, %v420_v39 }
 0x277 PF: > { %s13_s16 = sadd.s32 1, %s677_s16   ;;  %s780_s12 = smov %s669_s14 }
 0x278   : > { %p10_p7 = scmp.ge.s32.totalorder %s13_s16, 10   ;;  %s781_s13 = smov %s673_s15 }
 0x279   : > { %s782_s14 = smov %s785_s17  ;;  %s783_s15 = smov %s789_s18 }
 0x27a   :  { %12 = sbr.rel (!%p10_p7) target bundleno = 3 (0x3), region = 76 }

// kernel: basic_transformer_block.8
= control target key start
LH: loop header
LB: loop body
LE: loop exit
PB: predicated region body
PF: predicated region fallthrough
CT: control target
= control target key end

     0   :  { %s1051_s27 = smov 0   ;;  %s1053_s28 = smov 0   ;;  %s1162_s0 = inlined_call_operand.vmem [shape: bf16[2,8,32], index: 0, kind: input, shape index: {}]   ;;  %s1163_s1 = inlined_call_operand.vmem [shape: f32[1,32], index: 1, kind: input, shape index: {}]   ;;  %s1164_s2 = inlined_call_operand.vmem [shape: f32[1,32], index: 2, kind: input, shape index: {}]   ;;  %s1165_s3 = inlined_call_operand.vmem [shape: bf16[4,32,8], index: 3, kind: input, shape index: {}]   ;;  %s1166_s4 = inlined_call_operand.vmem [shape: bf16[4,32,8], index: 4, kind: input, shape index: {}]   ;;  %s1167_s5 = inlined_call_operand.vmem [shape: bf16[4,32,8], index: 5, kind: input, shape index: {}]   ;;  %s1168_s6 = inlined_call_operand.vmem [shape: bf16[2,4,8,8], index: 6, kind: output, shape index: {0}]   ;;  %s1169_s7 = inlined_call_operand.vmem [shape: bf16[2,4,8,8], index: 7, kind: output, shape index: {1}]   ;;  %s1170_s8 = inlined_call_operand.vmem [shape: bf16[2,4,8,8], index: 8, kind: output, shape index: {2}]  }
   0x1   :  { %1171 = sst [smem:[#allocation4_spill]] %s1162_s0  ;;  %s1055_s29 = smov 0  }
   0x2   :  { %1172 = sst [smem:[#allocation5_spill]] %s1165_s3  ;;  %s1057_s30 = smov 0  }
   0x3   :  { %s1059_s9 = smov 0  }
   0x4 LB: > { %s31_s10 = sadd.s32 1, %s995_s29  ;;  %s38_s11 = sadd.s32 1, %s999_s30  ;;  %s1003_s9 = sphi %s1059_s9, %s19_s9   ;;  %s999_s30 = sphi %s1057_s30, %s1180_s30   ;;  %s995_s29 = sphi %s1055_s29, %s1179_s29   ;;  %s991_s28 = sphi %s1053_s28, %s1178_s28   ;;  %s987_s27 = sphi %s1051_s27, %s1177_s27  }
   0x5   : > { %p32_p0 = scmp.ge.s32.totalorder %s31_s10, 4  ;;  %p865_p1 = scmp.ge.s32.totalorder %s1003_s9, 1 }
   0x6   : > { %p332_p2 = scmp.lt.s32.totalorder %s1003_s9, 9 }
   0x7   : > { %s1182_s10 = smov (%p32_p0, %s31_s10), 0  ;;  %s1184_s11 = smov (!%p32_p0, %s38_s11), %s999_s30 }
   0x8   : > { %p333_p3 = pnand %p865_p1, %p332_p2  ;;  %p40_p4 = scmp.ge.s32.totalorder %s1184_s11, 2 }
   0x9   : > { %p411_p5 = scmp.lt.s32.totalorder (!%p333_p3), %s991_s28, 1  ;;  %p418_p6 = scmp.lt.s32.totalorder (!%p333_p3), %s987_s27, 3 }
   0xa   : > { %s1186_s11 = smov (%p40_p4, %s1184_s11), 0  ;;  %336 = sbr.rel (%p333_p3) target bundleno = 450 (0x1c2), region = 44 }
   0xb   : > { %1173 = sst [smem:[#allocation3_spill]] %s1186_s11  ;;  %p879_p7 = scmp.ne.s32.totalorder (!%p333_p3), %s987_s27, 0 }
   0xc   : > { %s1174_s0 = sld [smem:[#allocation4_spill]] (!%p333_p3) }
   0xd   : > { %s1175_s3 = sld [smem:[#allocation5_spill]] (!%p333_p3) }
   0xf   : > { %s1188_s28 = smov (!%p411_p5, %s991_s28), 1 }
  0x10   : > { %s419_s12 = scalar_select %p418_p6, %s987_s27, 3 }
  0x11   : > { %s866_s13 = sshll.u32 %s1188_s28, 2 }
  0x12   : > { %s417_s16 = scalar_lea.vmem %s1174_s0, %s866_s13  ;;  %s909_s17 = sshll.u32 %s419_s12, 4 }
  0x13   : > { %s1091_s20 = scalar_lea.vmem %s1175_s3, %s909_s17  ;;  %s1096_s23 = scalar_lea.vmem %s1166_s4, %s909_s17 }
  0x14   : > { %s1101_s26 = scalar_lea.vmem %s1167_s5, %s909_s17  ;;  %s441_s28 = sadd.s32 %s866_s13, %s419_s12 }
  0x15   : > { %s1103_s11 = sshll.u32 %s441_s28, 2  ;;  %470 = sbr.rel (%p879_p7) target bundleno = 300 (0x12c), region = 48 }
  0x16   : > { %s443_s18 = scalar_lea.vmem %s1168_s6, %s1103_s11  ;;  %s454_s21 = scalar_lea.vmem %s1169_s7, %s1103_s11 }
  0x17   : > { %s465_s24 = scalar_lea.vmem %s1170_s8, %s1103_s11 }
  0x1a   : > { %v471_v0 = vld [vmem:[%s417_s16] sm:$0xf]  ;;  %vm475_vm0 = vcmask 261120   ;;  %v1005_v3 = vmov 32.0   ;;  %vm514_vm5 = vcmask 257024  }
  0x1b   : > { %v474_v1 = vunpack.c.l.bf16 %v471_v0  ;;  %961 = vrcp.f32 %v1005_v3  ;;  %v959_v24 = vld [vmem:[%s1163_s1] ss:$0 sm:$0xff] }
  0x1c   : > { %v960_v26 = vld [vmem:[%s1164_s2] ss:$0 sm:$0xff] }
  0x1d   : > { %v476_v2 = vsel %vm475_vm0, %v474_v1, 0.0 }
  0x1e   : > { %477 = vadd.xlane.f32.xlu0 %v476_v2 }
  0x21   : > { %v962_v4 = vpop.eup %961 }
  0x22   : > { %v480_v5 = vmul.f32 32.0, %v962_v4  ;;  %vm484_vm1 = vweird.f32 %v962_v4 }
  0x24   : > { %v481_v6 = vsub.f32 1.0, %v480_v5 }
  0x26   : > { %v482_v7 = vmul.f32 %v962_v4, %v481_v6 }
  0x28   : > { %v483_v8 = vadd.f32 %v962_v4, %v482_v7 }
  0x2a   : > { %v485_v9 = vsel %vm484_vm1, %v962_v4, %v483_v8 }
  0x91   : > { %v478_v10 = vpop.xlane.xlu0 %477 }
  0x92   : > { %v486_v11 = vmul.f32 %v485_v9, %v478_v10 }
  0x94   : > { %v487_v12 = vsub.f32 %v474_v1, %v486_v11 }
  0x96   : > { %v488_v13 = vmul.f32 %v487_v12, %v487_v12 }
  0x98   : > { %v489_v14 = vsel %vm475_vm0, %v488_v13, 0.0 }
  0x99   : > { %490 = vadd.xlane.f32.xlu0 %v489_v14 }
 0x10c   : > { %v491_v15 = vpop.xlane.xlu0 %490 }
 0x10d   : > { %v492_v16 = vmul.f32 %v491_v15, %v485_v9 }
 0x10f   : > { %v493_v17 = vadd.f32 1e-05, %v492_v16 }
 0x111   : > { %963 = vrsqrt.f32 %v493_v17  ;;  %vm500_vm3 = vweird.f32 %v493_v17 }
 0x117   : > { %v964_v18 = vpop.eup %963 }
 0x118   : > { %v495_v19 = vmul.f32 %v964_v18, %v493_v17  ;;  %vm501_vm2 = vweird.f32 %v964_v18 }
 0x119   : > { %vm502_vm4 = vmor %vm500_vm3, %vm501_vm2 }
 0x11a   : > { %v496_v20 = vmul.f32 %v964_v18, %v495_v19 }
 0x11c   : > { %v497_v21 = vmul.f32 0.5, %v496_v20 }
 0x11e   : > { %v498_v22 = vsub.f32 1.5, %v497_v21 }
 0x120   : > { %v499_v23 = vmul.f32 %v964_v18, %v498_v22 }
 0x122   : > { %v503_v25 = vsel %vm502_vm4, %v964_v18, %v499_v23 }
 0x123   : > { %v504_v27 = vmul.f32 %v503_v25, %v487_v12 }
 0x125   : > { %v508_v28 = vmul.f32 %v959_v24, %v504_v27 }
 0x127   : > { %v512_v29 = vadd.f32 %v960_v26, %v508_v28 }
 0x129   : > { %v513_v30 = vpack.c.bf16 %v512_v29, %v512_v29 }
 0x12b   : > { %515 = vst.msk [vmem:[#allocation2] sm:$0xf] %vm514_vm5, %v513_v30 }
 0x12c PF: > { %v913_v31 = vld [vmem:[%s1091_s20 + $0x8] sm:$0xff]  ;;  %v912_v34 = vld [vmem:[%s1091_s20] sm:$0xff]  ;;  %vm533_vm6 = vcmask 261120   ;;  %vm551_vm7 = vcmask 60416  }
 0x12d   : > { %v915_v32 = vld [vmem:[%s1096_s23 + $0x8] sm:$0xff]  ;;  %543 = vmatpush.bf16.msra.mxu0 %v913_v31  ;;  %v914_v35 = vld [vmem:[%s1096_s23] sm:$0xff] }
 0x12e   : > { %v917_v33 = vld [vmem:[%s1101_s26 + $0x8] sm:$0xff]  ;;  %575 = vmatpush.bf16.msra.mxu1 %v915_v32  ;;  %v916_v36 = vld [vmem:[%s1101_s26] sm:$0xff] }
 0x12f   : > { %606 = vmatpush.bf16.msra.mxu2 %v917_v33 }
 0x131   : > { %544 = vmatpush.bf16.msra.mxu0 %v912_v34 }
 0x132   : > { %576 = vmatpush.bf16.msra.mxu1 %v914_v35  ;;  %v516_v37 = vld [vmem:[#allocation2] sm:$0xf] }
 0x133   : > { %607 = vmatpush.bf16.msra.mxu2 %v916_v36 }
 0x134   : > { %888 = vmatmul.msk.bf16.vlgmr.msra.gmra.mxu0 %vm533_vm6, %v516_v37 }
 0x135   : > { %897 = vmatmul.msk.bf16.vlgmr.msra.gmra.mxu1 %vm533_vm6, %v516_v37 }
 0x136   : > { %906 = vmatmul.msk.bf16.vlgmr.msra.gmra.mxu2 %vm533_vm6, %v516_v37 }
 0x1b1   : > { %v546_v38 = vpop.f32.mrf.mxu0 }
 0x1b2   : > { %v578_v39 = vpop.f32.mrf.mxu1  ;;  %v550_v40 = vpack.c.bf16 %v546_v38, %v546_v38 }
 0x1b3   : > { %v582_v41 = vpack.c.bf16 %v578_v39, %v578_v39 }
 0x1b4   : > { %552 = vst.msk [vmem:[%s443_s18] sm:$0xf] %vm551_vm7, %v550_v40 }
 0x1b5   : > { %583 = vst.msk [vmem:[%s454_s21] sm:$0xf] %vm551_vm7, %v582_v41 }
 0x1b9   : > { %v609_v42 = vpop.f32.mrf.mxu2  ;;  %v548_v44 = vpop.f32.mrf.mxu0 }
 0x1ba   : > { %v613_v43 = vpack.c.bf16 %v609_v42, %v609_v42  ;;  %v580_v45 = vpop.f32.mrf.mxu1 }
 0x1bc   : > { %614 = vst.msk [vmem:[%s465_s24] sm:$0xf] %vm551_vm7, %v613_v43 }
 0x1c1   : > { %v611_v46 = vpop.f32.mrf.mxu2 }
 0x1c2 PF: > { %s19_s9 = sadd.s32 1, %s1003_s9   ;;  %s1176_s26 = sld [smem:[#allocation3_spill]] }
 0x1c3   : > { %p16_p8 = scmp.ge.s32.totalorder %s19_s9, 10   ;;  %s1177_s27 = smov %s995_s29 }
 0x1c4   : > { %s1178_s28 = smov %s999_s30  ;;  %s1179_s29 = smov %s1182_s10 }
 0x1c5   :  { %18 = sbr.rel (!%p16_p8) target bundleno = 4 (0x4), region = 111 }
 0x1c8   : > { %s1180_s30 = smov %s1176_s26 }

// kernel: basic_transformer_block.11
= control target key start
LH: loop header
LB: loop body
LE: loop exit
PB: predicated region body
PF: predicated region fallthrough
CT: control target
= control target key end

     0   :  { %s594_s15 = smov 0   ;;  %s596_s16 = smov 0   ;;  %s663_s0 = inlined_call_operand.vmem [shape: bf16[2,8,32], index: 0, kind: input, shape index: {}]   ;;  %s664_s1 = inlined_call_operand.vmem [shape: f32[1,32], index: 1, kind: input, shape index: {}]   ;;  %s665_s2 = inlined_call_operand.vmem [shape: f32[1,32], index: 2, kind: input, shape index: {}]   ;;  %s666_s3 = inlined_call_operand.vmem [shape: bf16[4,32,8], index: 3, kind: input, shape index: {}]   ;;  %s667_s4 = inlined_call_operand.vmem [shape: bf16[2,4,8,8], index: 4, kind: output, shape index: {}]  }
   0x1   :  { %s598_s17 = smov 0   ;;  %s600_s18 = smov 0  }
   0x2   :  { %s602_s19 = smov 0  }
   0x3 LB: > { %s26_s20 = sadd.s32 1, %s558_s17  ;;  %s33_s21 = sadd.s32 1, %s562_s18  ;;  %s566_s19 = sphi %s602_s19, %s14_s19   ;;  %s562_s18 = sphi %s600_s18, %s671_s18   ;;  %s558_s17 = sphi %s598_s17, %s670_s17   ;;  %s554_s16 = sphi %s596_s16, %s669_s16   ;;  %s550_s15 = sphi %s594_s15, %s668_s15  }
   0x4   : > { %p27_p0 = scmp.ge.s32.totalorder %s26_s20, 4  ;;  %p460_p1 = scmp.ge.s32.totalorder %s566_s19, 1 }
   0x5   : > { %p199_p2 = scmp.lt.s32.totalorder %s566_s19, 9 }
   0x6   : > { %s673_s20 = smov (%p27_p0, %s26_s20), 0  ;;  %s675_s21 = smov (!%p27_p0, %s33_s21), %s562_s18 }
   0x7   : > { %p200_p3 = pnand %p460_p1, %p199_p2  ;;  %p35_p4 = scmp.ge.s32.totalorder %s675_s21, 2 }
   0x8   : > { %p238_p5 = scmp.lt.s32.totalorder (!%p200_p3), %s554_s16, 1  ;;  %p245_p6 = scmp.lt.s32.totalorder (!%p200_p3), %s550_s15, 3 }
   0x9   : > { %s677_s21 = smov (%p35_p4, %s675_s21), 0  ;;  %203 = sbr.rel (%p200_p3) target bundleno = 437 (0x1b5), region = 36 }
   0xa   : > { %p466_p7 = scmp.ne.s32.totalorder (!%p200_p3), %s550_s15, 0 }
   0xe   : > { %s679_s16 = smov (!%p238_p5, %s554_s16), 1 }
   0xf   : > { %s246_s22 = scalar_select %p245_p6, %s550_s15, 3 }
  0x10   : > { %s461_s23 = sshll.u32 %s679_s16, 2  ;;  %265 = sbr.rel (%p466_p7) target bundleno = 295 (0x127), region = 40 }
  0x11   : > { %s244_s26 = scalar_lea.vmem %s663_s0, %s461_s23  ;;  %s478_s27 = sshll.u32 %s246_s22, 4 }
  0x12   : > { %s630_s30 = scalar_lea.vmem %s666_s3, %s478_s27  ;;  %s258_s5 = sadd.s32 %s461_s23, %s246_s22 }
  0x13   : > { %s465_s6 = sshll.u32 %s258_s5, 2 }
  0x14   : > { %s635_s9 = scalar_lea.vmem %s667_s4, %s465_s6 }
  0x15   : > { %v266_v0 = vld [vmem:[%s244_s26] sm:$0xf]  ;;  %vm270_vm0 = vcmask 261120   ;;  %v568_v3 = vmov 32.0   ;;  %vm309_vm5 = vcmask 257024  }
  0x16   : > { %v269_v1 = vunpack.c.l.bf16 %v266_v0  ;;  %524 = vrcp.f32 %v568_v3  ;;  %v522_v24 = vld [vmem:[%s664_s1] ss:$0 sm:$0xff] }
  0x17   : > { %v523_v26 = vld [vmem:[%s665_s2] ss:$0 sm:$0xff] }
  0x18   : > { %v271_v2 = vsel %vm270_vm0, %v269_v1, 0.0 }
  0x19   : > { %272 = vadd.xlane.f32.xlu0 %v271_v2 }
  0x1c   : > { %v525_v4 = vpop.eup %524 }
  0x1d   : > { %v275_v5 = vmul.f32 32.0, %v525_v4  ;;  %vm279_vm1 = vweird.f32 %v525_v4 }
  0x1f   : > { %v276_v6 = vsub.f32 1.0, %v275_v5 }
  0x21   : > { %v277_v7 = vmul.f32 %v525_v4, %v276_v6 }
  0x23   : > { %v278_v8 = vadd.f32 %v525_v4, %v277_v7 }
  0x25   : > { %v280_v9 = vsel %vm279_vm1, %v525_v4, %v278_v8 }
  0x8c   : > { %v273_v10 = vpop.xlane.xlu0 %272 }
  0x8d   : > { %v281_v11 = vmul.f32 %v280_v9, %v273_v10 }
  0x8f   : > { %v282_v12 = vsub.f32 %v269_v1, %v281_v11 }
  0x91   : > { %v283_v13 = vmul.f32 %v282_v12, %v282_v12 }
  0x93   : > { %v284_v14 = vsel %vm270_vm0, %v283_v13, 0.0 }
  0x94   : > { %285 = vadd.xlane.f32.xlu0 %v284_v14 }
 0x107   : > { %v286_v15 = vpop.xlane.xlu0 %285 }
 0x108   : > { %v287_v16 = vmul.f32 %v286_v15, %v280_v9 }
 0x10a   : > { %v288_v17 = vadd.f32 1e-05, %v287_v16 }
 0x10c   : > { %526 = vrsqrt.f32 %v288_v17  ;;  %vm295_vm3 = vweird.f32 %v288_v17 }
 0x112   : > { %v527_v18 = vpop.eup %526 }
 0x113   : > { %v290_v19 = vmul.f32 %v527_v18, %v288_v17  ;;  %vm296_vm2 = vweird.f32 %v527_v18 }
 0x114   : > { %vm297_vm4 = vmor %vm295_vm3, %vm296_vm2 }
 0x115   : > { %v291_v20 = vmul.f32 %v527_v18, %v290_v19 }
 0x117   : > { %v292_v21 = vmul.f32 0.5, %v291_v20 }
 0x119   : > { %v293_v22 = vsub.f32 1.5, %v292_v21 }
 0x11b   : > { %v294_v23 = vmul.f32 %v527_v18, %v293_v22 }
 0x11d   : > { %v298_v25 = vsel %vm297_vm4, %v527_v18, %v294_v23 }
 0x11e   : > { %v299_v27 = vmul.f32 %v298_v25, %v282_v12 }
 0x120   : > { %v303_v28 = vmul.f32 %v522_v24, %v299_v27 }
 0x122   : > { %v307_v29 = vadd.f32 %v523_v26, %v303_v28 }
 0x124   : > { %v308_v30 = vpack.c.bf16 %v307_v29, %v307_v29 }
 0x126   : > { %310 = vst.msk [vmem:[#allocation2] sm:$0xf] %vm309_vm5, %v308_v30 }
 0x127 PF: > { %v480_v31 = vld [vmem:[%s630_s30 + $0x8] sm:$0xff]  ;;  %v479_v32 = vld [vmem:[%s630_s30] sm:$0xff]  ;;  %vm328_vm6 = vcmask 261120   ;;  %vm346_vm7 = vcmask 60416  }
 0x128   : > { %338 = vmatpush.bf16.msra.mxu0 %v480_v31 }
 0x12c   : > { %339 = vmatpush.bf16.msra.mxu0 %v479_v32 }
 0x12d   : > { %v311_v33 = vld [vmem:[#allocation2] sm:$0xf] }
 0x12f   : > { %475 = vmatmul.msk.bf16.vlgmr.msra.gmra.mxu0 %vm328_vm6, %v311_v33 }
 0x1ac   : > { %v341_v34 = vpop.f32.mrf.mxu0 }
 0x1ad   : > { %v345_v35 = vpack.c.bf16 %v341_v34, %v341_v34 }
 0x1af   : > { %347 = vst.msk [vmem:[%s635_s9] sm:$0xf] %vm346_vm7, %v345_v35 }
 0x1b4   : > { %v343_v36 = vpop.f32.mrf.mxu0 }
 0x1b5 PF: > { %s14_s19 = sadd.s32 1, %s566_s19   ;;  %s668_s15 = smov %s558_s17 }
 0x1b6   : > { %p11_p8 = scmp.ge.s32.totalorder %s14_s19, 10   ;;  %s669_s16 = smov %s562_s18 }
 0x1b7   : > { %s670_s17 = smov %s673_s20  ;;  %s671_s18 = smov %s677_s21 }
 0x1b8   :  { %13 = sbr.rel (!%p11_p8) target bundleno = 3 (0x3), region = 73 }

// kernel: basic_transformer_block.10
= control target key start
LH: loop header
LB: loop body
LE: loop exit
PB: predicated region body
PF: predicated region fallthrough
CT: control target
= control target key end

     0   :  { %s527_s15 = smov 0   ;;  %s529_s16 = smov 0   ;;  %s576_s0 = inlined_call_operand.vmem [shape: bf16[2,4,8,8], index: 0, kind: input, shape index: {}]   ;;  %s577_s1 = inlined_call_operand.vmem [shape: bf16[32,32], index: 1, kind: input, shape index: {}]   ;;  %s578_s2 = inlined_call_operand.vmem [shape: f32[1,32], index: 2, kind: input, shape index: {}]   ;;  %s579_s3 = inlined_call_operand.vmem [shape: bf16[2,8,32], index: 3, kind: input, shape index: {}]   ;;  %s580_s4 = inlined_call_operand.vmem [shape: bf16[2,8,32], index: 4, kind: output, shape index: {}]  }
   0x1   :  { %s531_s17 = smov 0  }
   0x2 LB: > { %s26_s18 = sadd.s32 1, %s493_s16  ;;  %p423_p0 = scmp.ge.s32.totalorder %s497_s17, 1  ;;  %s497_s17 = sphi %s531_s17, %s14_s17   ;;  %s493_s16 = sphi %s529_s16, %s582_s16   ;;  %s489_s15 = sphi %s527_s15, %s581_s15  }
   0x3   : > { %p28_p1 = scmp.ge.s32.totalorder %s26_s18, 2  ;;  %p195_p2 = scmp.lt.s32.totalorder %s497_s17, 3 }
   0x5   : > { %s584_s18 = smov (%p28_p1, %s26_s18), 0  ;;  %p196_p3 = pnand %p423_p0, %p195_p2 }
   0x6   : > { %p233_p4 = scmp.lt.s32.totalorder (!%p196_p3), %s489_s15, 1  ;;  %s499_s23 = smov (!%p196_p3), 8  }
   0x7   : > { %199 = sbr.rel (%p196_p3) target bundleno = 279 (0x117), region = 36  ;;  %s500_s24 = smov (!%p196_p3), 24  }
   0x8   : > { %s501_s25 = smov (!%p196_p3), 16  }
   0xc   : > { %s586_s15 = smov (!%p233_p4, %s489_s15), 1  ;;  %v441_v8 = vld [vmem:[%s577_s1 + $0x8] sm:$0xff]  ;;  %v440_v9 = vld [vmem:[%s577_s1] sm:$0xff]  ;;  %vm275_vm0 = vcmask 64512   ;;  %vm279_vm1 = vcmask 130048   ;;  %vm282_vm2 = vcmask 195584  }
   0xd   : > { %s439_s19 = sshll.u32 %s586_s15, 4  ;;  %314 = vmatpush.bf16.msra.mxu0 %v441_v8  ;;  %vm305_vm3 = vcmask 261120   ;;  %s426_s30 = sshll.u32 %s586_s15, 2  ;;  %v474_v18 = vld [vmem:[%s578_s2] ss:$0 sm:$0xff]  ;;  %vm325_vm4 = vcmask 257024  }
   0xe   : > { %s240_s22 = scalar_lea.vmem %s576_s0, %s439_s19  ;;  %s247_s7 = scalar_lea.vmem %s579_s3, %s426_s30 }
   0xf   : > { %v257_v0 = vld [vmem:[%s240_s22 + $0x4] sm:$0xf]  ;;  %v446_v1 = vld [vmem:[%s240_s22 + $0x8] sm:$0xff]   ;;  %v256_v11 = vld [vmem:[%s240_s22] sm:$0xf]  ;;  %s254_s12 = scalar_lea.vmem %s580_s4, %s426_s30 }
  0x10   : > { %v261_v2 = vunpack.c.l.b16 %v257_v0  ;;  %v445_v3 = vunpack.c.h.b16 %v446_v1  ;;  %v444_v6 = vunpack.c.l.b16 %v446_v1  ;;  %v321_v17 = vld [vmem:[%s247_s7] sm:$0xf] }
  0x11   : > { %315 = vmatpush.bf16.msra.mxu0 %v440_v9  ;;  %v322_v19 = vunpack.c.l.bf16 %v321_v17 }
  0x12   : > { %v262_v4 = vpack.c.b16 %v261_v2, %v261_v2  ;;  %v272_v5 = vpack.c.b16 %v445_v3, %v445_v3  ;;  %v267_v7 = vpack.c.b16 %v444_v6, %v444_v6 }
  0x14   : > { %263 = vrot.lane.b32.xlu0 %v262_v4, %s499_s23  ;;  %273 = vrot.lane.b32.xlu1 %v272_v5, %s500_s24 }
  0x1c   : > { %268 = vrot.lane.b32.xlu0 %v267_v7, %s501_s25 }
  0x86   : > { %v264_v10 = vpop.permute.xlu0 %263  ;;  %v274_v12 = vpop.permute.xlu1 %273 }
  0x87   : > { %v278_v13 = vsel %vm275_vm0, %v256_v11, %v264_v10 }
  0x8e   : > { %v269_v14 = vpop.permute.xlu0 %268 }
  0x8f   : > { %v281_v15 = vsel %vm279_vm1, %v278_v13, %v269_v14 }
  0x90   : > { %v284_v16 = vsel %vm282_vm2, %v281_v15, %v274_v12 }
  0x91   : > { %436 = vmatmul.msk.bf16.vlgmr.msra.gmra.mxu0 %vm305_vm3, %v284_v16 }
 0x10e   : > { %v317_v20 = vpop.f32.mrf.mxu0 }
 0x10f   : > { %v318_v21 = vadd.f32 %v474_v18, %v317_v20 }
 0x111   : > { %v323_v22 = vadd.f32 %v322_v19, %v318_v21 }
 0x113   : > { %v324_v23 = vpack.c.bf16 %v323_v22, %v323_v22 }
 0x115   : > { %326 = vst.msk [vmem:[%s254_s12] sm:$0xf] %vm325_vm4, %v324_v23 }
 0x116   : > { %v319_v24 = vpop.f32.mrf.mxu0 }
 0x117 PF: > { %s14_s17 = sadd.s32 1, %s497_s17   ;;  %s581_s15 = smov %s493_s16 }
 0x118   : > { %p11_p5 = scmp.ge.s32.totalorder %s14_s17, 4   ;;  %s582_s16 = smov %s584_s18 }
 0x11a   :  { %13 = sbr.rel (!%p11_p5) target bundleno = 2 (0x2), region = 69 }

// kernel: basic_transformer_block.12
= control target key start
LH: loop header
LB: loop body
LE: loop exit
PB: predicated region body
PF: predicated region fallthrough
CT: control target
= control target key end

     0   :  { %s687_s15 = smov 0   ;;  %s689_s16 = smov 0   ;;  %s747_s0 = inlined_call_operand.vmem [shape: bf16[2,8,24], index: 0, kind: input, shape index: {}]   ;;  %s748_s1 = inlined_call_operand.vmem [shape: bf16[4,24,8], index: 1, kind: input, shape index: {}]   ;;  %s749_s2 = inlined_call_operand.vmem [shape: bf16[4,24,8], index: 2, kind: input, shape index: {}]   ;;  %s750_s3 = inlined_call_operand.vmem [shape: bf16[2,4,8,8], index: 3, kind: output, shape index: {0}]   ;;  %s751_s4 = inlined_call_operand.vmem [shape: bf16[2,4,8,8], index: 4, kind: output, shape index: {1}]  }
   0x1   :  { %s691_s17 = smov 0   ;;  %s693_s18 = smov 0  }
   0x2   :  { %s695_s19 = smov 0  }
   0x3 LB: > { %s27_s20 = sadd.s32 1, %s652_s17  ;;  %s34_s21 = sadd.s32 1, %s656_s18  ;;  %s660_s19 = sphi %s695_s19, %s15_s19   ;;  %s656_s18 = sphi %s693_s18, %s755_s18   ;;  %s652_s17 = sphi %s691_s17, %s754_s17   ;;  %s648_s16 = sphi %s689_s16, %s753_s16   ;;  %s644_s15 = sphi %s687_s15, %s752_s15  }
   0x4   : > { %p28_p0 = scmp.ge.s32.totalorder %s27_s20, 4  ;;  %p559_p1 = scmp.ge.s32.totalorder %s660_s19, 1 }
   0x5   : > { %p216_p2 = scmp.lt.s32.totalorder %s660_s19, 9 }
   0x6   : > { %s757_s20 = smov (%p28_p0, %s27_s20), 0  ;;  %s759_s21 = smov (!%p28_p0, %s34_s21), %s656_s18 }
   0x7   : > { %p217_p3 = pnand %p559_p1, %p216_p2  ;;  %p36_p4 = scmp.ge.s32.totalorder %s759_s21, 2 }
   0x8   : > { %p278_p5 = scmp.lt.s32.totalorder (!%p217_p3), %s644_s15, 3  ;;  %p271_p6 = scmp.lt.s32.totalorder (!%p217_p3), %s648_s16, 1 }
   0x9   : > { %s761_s21 = smov (%p36_p4, %s759_s21), 0  ;;  %220 = sbr.rel (%p217_p3) target bundleno = 166 (0xa6), region = 32 }
   0xe   : > { %s763_s15 = smov (!%p278_p5, %s644_s15), 3  ;;  %s765_s16 = smov (!%p271_p6, %s648_s16), 1  ;;  %vm328_vm0 = vcmask 1043456   ;;  %vm324_vm1 = vcmask 195584   ;;  %vm346_vm2 = vcmask 60416  }
   0xf   : > { %s581_s22 = smul.u32 12, %s763_s15  ;;  %s560_s23 = sshll.u32 %s765_s16, 2 }
  0x10   : > { %s296_s30 = sadd.s32 %s560_s23, %s763_s15  ;;  %s277_s7 = scalar_lea.vmem %s747_s0, %s560_s23 }
  0x11   : > { %s282_s26 = scalar_lea.vmem %s748_s1, %s581_s22  ;;  %s287_s29 = scalar_lea.vmem %s749_s2, %s581_s22  ;;  %v311_v10 = vld [vmem:[%s277_s7] sm:$0xf] }
  0x12   : > { %v314_v0 = vld [vmem:[%s282_s26 + $0x8] sm:$0xf]  ;;  %v579_v8 = vld [vmem:[%s282_s26] sm:$0xff]  ;;  %s564_s8 = sshll.u32 %s296_s30, 2 }
  0x13   : > { %v350_v1 = vld [vmem:[%s287_s29 + $0x8] sm:$0xf]  ;;  %v320_v2 = vunpack.c.l.b16 %v314_v0  ;;  %v580_v9 = vld [vmem:[%s287_s29] sm:$0xff]  ;;  %s298_s11 = scalar_lea.vmem %s750_s3, %s564_s8  ;;  %s309_s14 = scalar_lea.vmem %s751_s4, %s564_s8 }
  0x14   : > { %v356_v3 = vunpack.c.l.b16 %v350_v1 }
  0x15   : > { %v322_v4 = vpack.c.b16 %v320_v2, %v320_v2 }
  0x16   : > { %v358_v5 = vpack.c.b16 %v356_v3, %v356_v3 }
  0x17   : > { %v330_v6 = vsel %vm328_vm0, %v322_v4, 0 }
  0x18   : > { %v361_v7 = vsel %vm328_vm0, %v358_v5, 0  ;;  %338 = vmatpush.bf16.msra.mxu0 %v330_v6 }
  0x19   : > { %369 = vmatpush.bf16.msra.mxu1 %v361_v7 }
  0x1c   : > { %339 = vmatpush.bf16.msra.mxu0 %v579_v8 }
  0x1d   : > { %370 = vmatpush.bf16.msra.mxu1 %v580_v9 }
  0x1f   : > { %571 = vmatmul.msk.bf16.vlgmr.msra.gmra.mxu0 %vm324_vm1, %v311_v10 }
  0x20   : > { %576 = vmatmul.msk.bf16.vlgmr.msra.gmra.mxu1 %vm324_vm1, %v311_v10 }
  0x9c   : > { %v341_v11 = vpop.f32.mrf.mxu0 }
  0x9d   : > { %v372_v12 = vpop.f32.mrf.mxu1  ;;  %v345_v13 = vpack.c.bf16 %v341_v11, %v341_v11 }
  0x9e   : > { %v376_v14 = vpack.c.bf16 %v372_v12, %v372_v12 }
  0x9f   : > { %347 = vst.msk [vmem:[%s298_s11] sm:$0xf] %vm346_vm2, %v345_v13 }
  0xa0   : > { %377 = vst.msk [vmem:[%s309_s14] sm:$0xf] %vm346_vm2, %v376_v14 }
  0xa4   : > { %v343_v15 = vpop.f32.mrf.mxu0 }
  0xa5   : > { %v374_v16 = vpop.f32.mrf.mxu1 }
  0xa6 PF: > { %s15_s19 = sadd.s32 1, %s660_s19   ;;  %s752_s15 = smov %s652_s17 }
  0xa7   : > { %p12_p7 = scmp.ge.s32.totalorder %s15_s19, 10   ;;  %s753_s16 = smov %s656_s18 }
  0xa8   : > { %s754_s17 = smov %s757_s20  ;;  %s755_s18 = smov %s761_s21 }
  0xa9   :  { %14 = sbr.rel (!%p12_p7) target bundleno = 3 (0x3), region = 80 }

// kernel: basic_transformer_block.15
= control target key start
LH: loop header
LB: loop body
LE: loop exit
PB: predicated region body
PF: predicated region fallthrough
CT: control target
= control target key end

     0   :  { %vm43_vm0 = vcmask 261120   ;;  %v486_v5 = vmov 32.0   ;;  %vm107_vm6 = vcmask 257024   ;;  %s652_s0 = inlined_call_operand.vmem [shape: bf16[16,32], index: 0, kind: input, shape index: {}]   ;;  %s653_s1 = inlined_call_operand.vmem [shape: f32[1,32], index: 1, kind: input, shape index: {}]   ;;  %s654_s2 = inlined_call_operand.vmem [shape: f32[1,32], index: 2, kind: input, shape index: {}]   ;;  %s655_s4 = inlined_call_operand.vmem [shape: f32[1,128], index: 4, kind: input, shape index: {}]   ;;  %s656_s3 = inlined_call_operand.vmem [shape: bf16[32,128], index: 3, kind: input, shape index: {}]   ;;  %s657_s5 = inlined_call_operand.vmem [shape: bf16[32,128], index: 5, kind: input, shape index: {}]   ;;  %s658_s6 = inlined_call_operand.vmem [shape: f32[1,128], index: 6, kind: input, shape index: {}]   ;;  %s659_s8 = inlined_call_operand.vmem [shape: f32[1,32], index: 8, kind: input, shape index: {}]   ;;  %s660_s7 = inlined_call_operand.vmem [shape: bf16[128,32], index: 7, kind: input, shape index: {}]   ;;  %s661_s9 = inlined_call_operand.vmem [shape: bf16[16,32], index: 9, kind: output, shape index: {}]  }
   0x1   :  { %v462_v0 = vld [vmem:[%s652_s0] sm:$0xff]   ;;  %476 = vrcp.f32 %v486_v5  ;;  %v450_v25 = vld [vmem:[%s656_s3 + $0x8] sm:$0xff]  ;;  %v460_v61 = vld [vmem:[%s660_s7 + $0x38] sm:$0xff] }
   0x2   :  { %v541_v1 = vunpack.c.l.bf16 %v462_v0  ;;  %v545_v3 = vunpack.c.h.bf16 %v462_v0  ;;  %v452_v26 = vld [vmem:[%s657_s5 + $0x8] sm:$0xff]  ;;  %149 = vmatpush.bf16.msra.mxu0 %v450_v25  ;;  %v449_v29 = vld [vmem:[%s656_s3] sm:$0xff]  ;;  %348 = vmatpush.bf16.msra.mxu2 %v460_v61  ;;  %v459_v0 = vld [vmem:[%s660_s7 + $0x30] sm:$0xff] }
   0x3   :  { %183 = vmatpush.bf16.msra.mxu1 %v452_v26  ;;  %v451_v30 = vld [vmem:[%s657_s5] sm:$0xff] }
   0x4   :  { %v44_v2 = vsel %vm43_vm0, %v541_v1, 0.0  ;;  %v47_v4 = vsel %vm43_vm0, %v545_v3, 0.0  ;;  %v471_v40 = vld [vmem:[%s653_s1] ss:$0 sm:$0xff] }
   0x5   :  { %45 = vadd.xlane.f32.xlu0 %v44_v2  ;;  %v472_v43 = vld [vmem:[%s654_s2] ss:$0 sm:$0xff] }
   0x6   :  { %150 = vmatpush.bf16.msra.mxu0 %v449_v29  ;;  %v474_v57 = vld [vmem:[%s658_s6] ss:$0 sm:$0xff]  ;;  %349 = vmatpush.bf16.msra.mxu2 %v459_v0 }
   0x7   :  { %v477_v6 = vpop.eup %476  ;;  %184 = vmatpush.bf16.msra.mxu1 %v451_v30  ;;  %v455_v30 = vld [vmem:[%s660_s7 + $0x10] sm:$0xff] }
   0x8   :  { %v51_v7 = vmul.f32 32.0, %v477_v6  ;;  %vm55_vm1 = vweird.f32 %v477_v6 }
   0xa   :  { %v52_v8 = vsub.f32 1.0, %v51_v7 }
   0xc   :  { %v53_v9 = vmul.f32 %v477_v6, %v52_v8 }
   0xd   :  { %48 = vadd.xlane.f32.xlu0 %v47_v4 }
   0xe   :  { %v54_v10 = vadd.f32 %v477_v6, %v53_v9  ;;  %v458_v9 = vld [vmem:[%s660_s7 + $0x28] sm:$0xff] }
   0xf   :  { %350 = vmatpush.bf16.msra.mxu2 %v458_v9 }
  0x10   :  { %v56_v11 = vsel %vm55_vm1, %v477_v6, %v54_v10 }
  0x78   :  { %v46_v12 = vpop.xlane.xlu0 %45 }
  0x79   :  { %v57_v13 = vmul.f32 %v56_v11, %v46_v12 }
  0x7b   :  { %v59_v14 = vsub.f32 %v541_v1, %v57_v13 }
  0x7d   :  { %v61_v15 = vmul.f32 %v59_v14, %v59_v14 }
  0x7f   :  { %v63_v16 = vsel %vm43_vm0, %v61_v15, 0.0  ;;  %v457_v15 = vld [vmem:[%s660_s7 + $0x20] sm:$0xff] }
  0x80   :  { %64 = vadd.xlane.f32.xlu1 %v63_v16  ;;  %v49_v17 = vpop.xlane.xlu0 %48  ;;  %351 = vmatpush.bf16.msra.mxu2 %v457_v15 }
  0x81   :  { %v58_v18 = vmul.f32 %v56_v11, %v49_v17 }
  0x83   :  { %v60_v19 = vsub.f32 %v545_v3, %v58_v18 }
  0x85   :  { %v62_v20 = vmul.f32 %v60_v19, %v60_v19 }
  0x87   :  { %v66_v21 = vsel %vm43_vm0, %v62_v20, 0.0 }
  0x88   :  { %67 = vadd.xlane.f32.xlu1 %v66_v21 }
  0xf3   :  { %v65_v22 = vpop.xlane.xlu1 %64 }
  0xf4   :  { %v69_v23 = vmul.f32 %v65_v22, %v56_v11  ;;  %v456_v22 = vld [vmem:[%s660_s7 + $0x18] sm:$0xff] }
  0xf5   :  { %352 = vmatpush.bf16.msra.mxu2 %v456_v22 }
  0xf6   :  { %v71_v24 = vadd.f32 1e-05, %v69_v23 }
  0xf8   :  { %478 = vrsqrt.f32 %v71_v24  ;;  %vm79_vm3 = vweird.f32 %v71_v24 }
  0xf9   :  { %353 = vmatpush.bf16.msra.mxu2 %v455_v30 }
  0xfb   :  { %v68_v27 = vpop.xlane.xlu1 %67 }
  0xfc   :  { %v70_v28 = vmul.f32 %v68_v27, %v56_v11 }
  0xfe   :  { %v479_v31 = vpop.eup %478  ;;  %v72_v32 = vadd.f32 1e-05, %v70_v28 }
  0xff   :  { %v74_v33 = vmul.f32 %v479_v31, %v71_v24  ;;  %vm80_vm2 = vweird.f32 %v479_v31 }
 0x100   :  { %480 = vrsqrt.f32 %v72_v32  ;;  %vm81_vm4 = vmor %vm79_vm3, %vm80_vm2  ;;  %vm89_vm7 = vweird.f32 %v72_v32 }
 0x101   :  { %v75_v34 = vmul.f32 %v479_v31, %v74_v33 }
 0x103   :  { %v76_v35 = vmul.f32 0.5, %v75_v34 }
 0x105   :  { %v77_v36 = vsub.f32 1.5, %v76_v35 }
 0x106   :  { %v481_v37 = vpop.eup %480 }
 0x107   :  { %v78_v38 = vmul.f32 %v479_v31, %v77_v36  ;;  %v84_v39 = vmul.f32 %v481_v37, %v72_v32  ;;  %vm90_vm5 = vweird.f32 %v481_v37 }
 0x108   :  { %vm91_vm8 = vmor %vm89_vm7, %vm90_vm5 }
 0x109   :  { %v82_v41 = vsel %vm81_vm4, %v479_v31, %v78_v38  ;;  %v85_v42 = vmul.f32 %v481_v37, %v84_v39 }
 0x10a   :  { %v93_v44 = vmul.f32 %v82_v41, %v59_v14  ;;  %v453_v41 = vld [vmem:[%s660_s7] sm:$0xff] }
 0x10b   :  { %v86_v45 = vmul.f32 0.5, %v85_v42 }
 0x10c   :  { %v98_v46 = vmul.f32 %v471_v40, %v93_v44 }
 0x10d   :  { %v87_v47 = vsub.f32 1.5, %v86_v45 }
 0x10e   :  { %v103_v48 = vadd.f32 %v472_v43, %v98_v46 }
 0x10f   :  { %v88_v49 = vmul.f32 %v481_v37, %v87_v47 }
 0x110   :  { %v105_v50 = vpack.c.bf16 %v103_v48, %v103_v48 }
 0x111   :  { %v92_v51 = vsel %vm91_vm8, %v481_v37, %v88_v49  ;;  %v454_v37 = vld [vmem:[%s660_s7 + $0x8] sm:$0xff] }
 0x112   :  { %108 = vst.msk [vmem:[#allocation2] sm:$0xf] %vm107_vm6, %v105_v50  ;;  %v94_v52 = vmul.f32 %v92_v51, %v60_v19  ;;  %354 = vmatpush.bf16.msra.mxu2 %v454_v37  ;;  %v487_v50 = vmov 0.0  }
 0x113   :  { %110 = vst.msk [vmem:[#allocation3] sm:$0xff] %vm43_vm0, %v487_v50 }
 0x114   :  { %v99_v53 = vmul.f32 %v471_v40, %v94_v52  ;;  %111 = vst.msk [vmem:[#allocation3 + $0x8] sm:$0xff] %vm43_vm0, %v487_v50 }
 0x116   :  { %v104_v54 = vadd.f32 %v472_v43, %v99_v53  ;;  %355 = vmatpush.bf16.msra.mxu2 %v453_v41 }
 0x118   :  { %v106_v55 = vpack.c.bf16 %v104_v54, %v104_v54 }
 0x11a   :  { %109 = vst.msk [vmem:[#allocation2 + $0x4] sm:$0xf] %vm107_vm6, %v106_v55 }
 0x121   :  { %v448_v56 = vld [vmem:[#allocation2] sm:$0xff] }
 0x122   :  { %404 = vmatmul.msk.bf16.vlgmr.msra.gmra.mxu0 %vm43_vm0, %v448_v56  ;;  %413 = vmatmul.msk.bf16.vlgmr.msra.gmra.mxu1 %vm43_vm0, %v448_v56 }
 0x19f   :  { %v186_v58 = vpop.f32.mrf.mxu1 }
 0x1a0   :  { %v578_v59 = vadd.f32 %v474_v57, %v186_v58 }
 0x1a2   :  { %v581_v60 = vmul.f32 0.70710677, %v578_v59 }
 0x1a4   :  { %v195_v62 = vmul.f32 %v581_v60, %v581_v60 }
 0x1a6   :  { %v196_v63 = vmin.f32 %v195_v62, 16.0 }
 0x1a7   :  { %v188_v2 = vpop.f32.mrf.mxu1 }
 0x1a8   :  { %v197_v4 = vmul.f32 2.1237322e-06, %v196_v63  ;;  %v208_v5 = vmul.f32 3.8918573e-05, %v196_v63  ;;  %v591_v6 = vadd.f32 %v474_v57, %v188_v2 }
 0x1aa   :  { %v198_v7 = vadd.f32 0.00028619796, %v197_v4  ;;  %v209_v8 = vadd.f32 0.001143296, %v208_v5  ;;  %v597_v10 = vmul.f32 0.70710677, %v591_v6 }
 0x1ac   :  { %v199_v11 = vmul.f32 %v198_v7, %v196_v63  ;;  %v210_v12 = vmul.f32 %v209_v8, %v196_v63  ;;  %v235_v13 = vmul.f32 %v597_v10, %v597_v10 }
 0x1ae   :  { %v211_v14 = vadd.f32 0.014752088, %v210_v12  ;;  %v604_v16 = vmin.f32 %v235_v13, 16.0  ;;  %v200_v17 = vadd.f32 0.0036580483, %v199_v11  ;;  %v152_v11 = vpop.f32.mrf.mxu0 }
 0x1b0   :  { %v212_v18 = vmul.f32 %v211_v14, %v196_v63  ;;  %v237_v19 = vmul.f32 2.1237322e-06, %v604_v16  ;;  %v248_v20 = vmul.f32 3.8918573e-05, %v604_v16  ;;  %v201_v25 = vmul.f32 %v200_v17, %v196_v63 }
 0x1b2   :  { %v213_v21 = vadd.f32 0.112945676, %v212_v18  ;;  %v238_v23 = vadd.f32 0.00028619796, %v237_v19  ;;  %v249_v24 = vadd.f32 0.001143296, %v248_v20 }
 0x1b3   :  { %v202_v32 = vadd.f32 0.05243302, %v201_v25 }
 0x1b4   :  { %v214_v26 = vmul.f32 %v213_v21, %v196_v63  ;;  %v239_v27 = vmul.f32 %v238_v23, %v604_v16  ;;  %v250_v28 = vmul.f32 %v249_v24, %v604_v16  ;;  %v473_v23 = vld [vmem:[%s655_s4] ss:$0 sm:$0xff]  ;;  %v191_v24 = vmul.f32 0.5, %v578_v59 }
 0x1b5   :  { %v203_v39 = vmul.f32 %v202_v32, %v196_v63  ;;  %v153_v30 = vadd.f32 %v473_v23, %v152_v11  ;;  %v475_v59 = vld [vmem:[%s659_s8] ss:$0 sm:$0xff] }
 0x1b6   :  { %v215_v29 = vadd.f32 0.4994258, %v214_v26  ;;  %v251_v31 = vadd.f32 0.014752088, %v250_v28  ;;  %v240_v34 = vadd.f32 0.0036580483, %v239_v27  ;;  %v154_v26 = vpop.f32.mrf.mxu0 }
 0x1b7   :  { %v204_v44 = vadd.f32 0.18741608, %v203_v39  ;;  %v192_v28 = vmul.f32 0.5, %v591_v6 }
 0x1b8   :  { %v216_v33 = vmul.f32 %v215_v29, %v196_v63  ;;  %v252_v35 = vmul.f32 %v251_v31, %v604_v16  ;;  %v241_v40 = vmul.f32 %v240_v34, %v604_v16  ;;  %v155_v31 = vadd.f32 %v473_v23, %v154_v26 }
 0x1b9   :  { %v205_v51 = vmul.f32 %v204_v44, %v196_v63 }
 0x1ba   :  { %v217_v36 = vadd.f32 1.0, %v216_v33  ;;  %v253_v38 = vadd.f32 0.112945676, %v252_v35  ;;  %v242_v45 = vadd.f32 0.05243302, %v241_v40  ;;  %v282_v35 = vld [vmem:[#allocation3] sm:$0xff] }
 0x1bb   :  { %v206_v57 = vadd.f32 1.1283791, %v205_v51 }
 0x1bc   :  { %482 = vrcp.f32 %v217_v36  ;;  %v254_v42 = vmul.f32 %v253_v38, %v604_v16  ;;  %v243_v52 = vmul.f32 %v242_v45, %v604_v16  ;;  %v229_v54 = vand.u32 2147483648, %v217_v36  ;;  %v283_v38 = vld [vmem:[#allocation3 + $0x8] sm:$0xff] }
 0x1bd   :  { %v227_v56 = vand.u32 2147483647, %v217_v36  ;;  %vm223_vm10 = vweird.f32 %v217_v36  ;;  %v207_v63 = vmul.f32 %v206_v57, %v581_v60 }
 0x1be   :  { %v255_v43 = vadd.f32 0.4994258, %v254_v42  ;;  %v244_v58 = vadd.f32 0.18741608, %v243_v52  ;;  %v230_v62 = vor.u32 1.1754944e-38, %v229_v54 }
 0x1bf   :  { %vm228_vm12 = vcmp.eq.f32.partialorder %v227_v56, 8.507059e+37 }
 0x1c0   :  { %v256_v46 = vmul.f32 %v255_v43, %v604_v16  ;;  %v245_v5 = vmul.f32 %v244_v58, %v604_v16 }
 0x1c2   :  { %v483_v47 = vpop.eup %482  ;;  %v257_v49 = vadd.f32 1.0, %v256_v46  ;;  %v246_v13 = vadd.f32 1.1283791, %v245_v5 }
 0x1c3   :  { %v219_v48 = vmul.f32 %v483_v47, %v217_v36  ;;  %vm224_vm9 = vweird.f32 %v483_v47 }
 0x1c4   :  { %484 = vrcp.f32 %v257_v49  ;;  %vm225_vm11 = vmor %vm223_vm10, %vm224_vm9  ;;  %v269_v12 = vand.u32 2147483648, %v257_v49  ;;  %v267_v15 = vand.u32 2147483647, %v257_v49  ;;  %vm263_vm14 = vweird.f32 %v257_v49 }
 0x1c5   :  { %v220_v53 = vsub.f32 1.0, %v219_v48  ;;  %v247_v20 = vmul.f32 %v246_v13, %v597_v10 }
 0x1c6   :  { %v270_v19 = vor.u32 1.1754944e-38, %v269_v12  ;;  %vm268_vm1 = vcmp.eq.f32.partialorder %v267_v15, 8.507059e+37 }
 0x1c7   :  { %v221_v55 = vmul.f32 %v483_v47, %v220_v53 }
 0x1c9   :  { %v222_v61 = vadd.f32 %v483_v47, %v221_v55 }
 0x1ca   :  { %v485_v0 = vpop.eup %484 }
 0x1cb   :  { %v226_v2 = vsel %vm225_vm11, %v483_v47, %v222_v61  ;;  %v259_v7 = vmul.f32 %v485_v0, %v257_v49  ;;  %vm264_vm13 = vweird.f32 %v485_v0 }
 0x1cc   :  { %v231_v4 = vsel %vm228_vm12, %v230_v62, %v226_v2  ;;  %vm265_vm15 = vmor %vm263_vm14, %vm264_vm13 }
 0x1cd   :  { %v232_v8 = vmul.f32 %v231_v4, %v207_v63  ;;  %v260_v9 = vsub.f32 1.0, %v259_v7 }
 0x1cf   :  { %v261_v14 = vmul.f32 %v485_v0, %v260_v9  ;;  %v414_v17 = vclamps-f32 %v232_v8, 1.0 }
 0x1d1   :  { %v262_v18 = vadd.f32 %v485_v0, %v261_v14  ;;  %v275_v16 = vadd.f32 1.0, %v414_v17 }
 0x1d3   :  { %v266_v60 = vsel %vm265_vm15, %v485_v0, %v262_v18  ;;  %v277_v27 = vmul.f32 %v275_v16, %v191_v24 }
 0x1d4   :  { %v271_v21 = vsel %vm268_vm1, %v270_v19, %v266_v60 }
 0x1d5   :  { %v272_v22 = vmul.f32 %v271_v21, %v247_v20  ;;  %v279_v32 = vmul.f32 %v277_v27, %v153_v30 }
 0x1d7   :  { %v415_v25 = vclamps-f32 %v272_v22, 1.0 }
 0x1d9   :  { %v276_v29 = vadd.f32 1.0, %v415_v25 }
 0x1db   :  { %v278_v10 = vmul.f32 %v276_v29, %v192_v28 }
 0x1dd   :  { %v280_v33 = vmul.f32 %v278_v10, %v155_v31 }
 0x1df   :  { %v281_v34 = vpack.c.bf16 %v280_v33, %v279_v32 }
 0x1e1   :  { %356 = vmatmul.bf16.vlgmr.msra.gmra.mxu2 %v281_v34 }
 0x264   :  { %v357_v36 = vpop.f32.mrf.mxu2 }
 0x265   :  { %v362_v37 = vadd.f32 %v357_v36, %v282_v35 }
 0x267   :  { %364 = vst.msk [vmem:[#allocation3] sm:$0xff] %vm43_vm0, %v362_v37 }
 0x26c   :  { %v359_v39 = vpop.f32.mrf.mxu2 }
 0x26d   :  { %v363_v6 = vadd.f32 %v359_v39, %v283_v38 }
 0x26e   :  { %v369_v40 = vld [vmem:[#allocation3] sm:$0xff] }
 0x26f   :  { %v375_v41 = vadd.f32 %v475_v59, %v369_v40  ;;  %365 = vst.msk [vmem:[#allocation3 + $0x8] sm:$0xff] %vm43_vm0, %v363_v6 }
 0x271   :  { %v381_v42 = vadd.f32 %v541_v1, %v375_v41 }
 0x273   :  { %v383_v43 = vpack.c.bf16 %v381_v42, %v381_v42 }
 0x275   :  { %386 = vst.msk [vmem:[%s661_s9] sm:$0xf] %vm107_vm6, %v383_v43 }
 0x276   :  { %v370_v44 = vld [vmem:[#allocation3 + $0x8] sm:$0xff] }
 0x277   :  { %v376_v45 = vadd.f32 %v475_v59, %v370_v44 }
 0x279   :  { %v382_v46 = vadd.f32 %v545_v3, %v376_v45 }
 0x27b   :  { %v384_v47 = vpack.c.bf16 %v382_v46, %v382_v46 }
 0x27d   :  { %387 = vst.msk [vmem:[%s661_s9 + $0x4] sm:$0xf] %vm107_vm6, %v384_v47 }

</bundles_post_ra>
